<compile_context>
chip_gen: v6e
topology: v6e:2x2x1
jax: 0.10.0
libtpu: 0.0.40
codegen_flags: <defaults>
</compile_context>

<pallas_src>
import functools
import math

import jax
import jax.numpy as jnp
from jax import lax
from jax.experimental import pallas as pl
from jax.experimental.pallas import tpu as pltpu

_LOG_2PI = math.log(2.0 * math.pi)


def _nmf_loglik_kernel(a_ref, x_ref, bsc_ref, rbh_ref, out_ref, acc_ref,
                       *, n_valid, n_blk, blocks_per_core, ragged):
    """One grid step == one lane-dense block of n_blk columns of A / rows of x.

    Grid is (n_cores, blocks_per_core); axis 0 is "parallel" (megacore split),
    axis 1 is the reduction over N blocks.

    a_ref   : (S, n_blk)   columns of A, read directly out of z
    x_ref   : (n_blk, W)   matching rows of the data matrix
    bsc_ref : (S, W)       B / var            (resident, wrapper-hoisted)
    rbh_ref : (S, 1)       0.5*sum_w B^2/var  (resident, wrapper-hoisted)
    out_ref : (1, 1, 1)    per-core partial sum (written on the last block)
    acc_ref : (S, n_blk)   f32 partial sums of  a*(y - a*rb_half)
    """
    i = pl.program_id(1)                      # N-block index within this core

    @pl.when(i == 0)
    def _():
        acc_ref[...] = jnp.zeros_like(acc_ref)

    a = a_ref[...].astype(jnp.float32)                        # (S, n_blk)

    # Cross term on the MXU:  y[s, n] = sum_w (b[s,w]/var_w) * x[n, w].
    # HIGHEST precision kept deliberately: the expanded quadratic form relies
    # on this term's accuracy (W is tiny, so the extra MXU passes are free).
    y = lax.dot_general(bsc_ref[...], x_ref[...],
                        (((1,), (1,)), ((), ())),
                        precision=lax.Precision.HIGHEST,
                        preferred_element_type=jnp.float32)   # (S, n_blk)

    # sum_w [ a*b*x/var - 0.5*a^2*b^2/var ]  ==  a*(y - a*rb_half)
    contrib = a * (y - a * rbh_ref[...])

    if ragged:
        # Tail block reads past column N of z (B / sigma2 columns or OOB
        # garbage) and past row N of x -> zero those lanes.  jnp.where is a
        # select, so NaN/Inf garbage cannot leak through.
        col0 = (pl.program_id(0) * blocks_per_core + i) * n_blk
        lane = lax.broadcasted_iota(jnp.int32, contrib.shape, 1)
        contrib = jnp.where(col0 + lane < n_valid, contrib, 0.0)

    acc_ref[...] += contrib

    @pl.when(i == pl.num_programs(1) - 1)
    def _():
        out_ref[...] = jnp.sum(acc_ref[...], keepdims=True).reshape(1, 1, 1)


def _pick_n_blk(N, S, W, requested):
    """Largest 128-aligned block that fits the VMEM budget (and <= ceil(N))."""
    blk = max(128, (int(requested) // 128) * 128)
    blk = min(blk, ((N + 127) // 128) * 128)      # no wider than N (rounded up)
    # Double-buffered A + x tiles plus the f32 accumulator, capped ~24 MiB so
    # the same tile size is safe on v7x (64 MiB physical VMEM) and v5e/v6e.
    budget = 24 * 1024 * 1024
    bytes_per_col = (3 * S + 2 * W) * 4
    max_blk = max(128, (budget // bytes_per_col) // 128 * 128)
    return max(128, min(blk, max_blk))


def nmf_log_likelihood(x, z, N, W, n_blk=4096):
    """Pallas implementation of LikelihoodModelNMF(N, W).forward(x, z)."""
    S, zc = z.shape
    if zc != N + W + 1:
        raise ValueError(f"z must have {N + W + 1} columns, got {zc}")
    if S not in (1, W):
        raise ValueError("Normal(loc=[S,N,W], scale=[S]) broadcasting requires "
                         "S == W or S == 1 (as in the PyTorch module)")
    if x.shape != (N, W):
        raise ValueError(f"x must be [{N}, {W}], got {x.shape}")

    f32 = jnp.float32
    # Tiny per-column quantities (sigma2 broadcasts along the W axis).
    sigma2 = z[:, -1].astype(f32)                             # [S]
    sigma2_w = jnp.broadcast_to(sigma2, (W,)) if S == 1 else sigma2   # [W]
    inv_var = 1.0 / sigma2_w                                  # [W]
    b = z[:, N:N + W].astype(f32)                             # [S, W] (tiny)
    b_scaled = b * inv_var[None, :]                           # [S, W]
    rb_half = 0.5 * jnp.sum(b * b_scaled, axis=1, keepdims=True)      # [S, 1]

    # Everything loop-invariant is folded into one scalar here (wrapper side):
    #   -0.5*S*sum_{n,w} x^2/var  - 0.5*S*N*sum_w log(var) - 0.5*S*N*W*log(2pi)
    x2_term = jnp.sum(jnp.square(x.astype(f32)) * inv_var[None, :])
    logdet = jnp.sum(jnp.log(sigma2_w))
    const = ((-0.5 * S) * x2_term
             + (-0.5 * S * N) * logdet
             + (-0.5 * S * N * W) * _LOG_2PI)

    # Tiling: large lane-dense N blocks, A read straight out of z (no padded
    # HBM copy); ragged tails are masked in-kernel.
    n_blk = _pick_n_blk(N, S, W, n_blk)
    n_blocks = int(pl.cdiv(N, n_blk))
    if n_blocks >= 2 and n_blocks % 2 == 0:
        n_cores, bpc = 2, n_blocks // 2       # megacore split on v7x
    else:
        # TODO(synk): odd block counts fall back to a single core; an uneven
        # 2-way split would need per-core trip counts.
        n_cores, bpc = 1, n_blocks
    ragged = (n_cores * bpc * n_blk) != N

    vmem_bytes = (2 * (S + W) * n_blk + S * n_blk) * 4 + (1 << 20)
    vmem_limit = int(min(max(2 * vmem_bytes, 8 << 20), 32 << 20))

    kernel = functools.partial(_nmf_loglik_kernel, n_valid=N, n_blk=n_blk,
                               blocks_per_core=bpc, ragged=ragged)

    partials = pl.pallas_call(
        kernel,
        out_shape=jax.ShapeDtypeStruct((n_cores, 1, 1), f32),
        grid=(n_cores, bpc),
        in_specs=[
            # A columns, read directly from z (tail block masked in-kernel).
            pl.BlockSpec((S, n_blk), lambda c, i, bpc=bpc: (0, c * bpc + i)),
            # Matching x rows.
            pl.BlockSpec((n_blk, W), lambda c, i, bpc=bpc: (c * bpc + i, 0)),
            # Resident hoisted quantities.
            pl.BlockSpec((S, W), lambda c, i: (0, 0)),
            pl.BlockSpec((S, 1), lambda c, i: (0, 0)),
        ],
        out_specs=pl.BlockSpec((1, 1, 1), lambda c, i: (c, 0, 0)),
        scratch_shapes=[pltpu.VMEM((S, n_blk), f32)],          # lane-dense acc
        compiler_params=pltpu.CompilerParams(
            dimension_semantics=("parallel", "arbitrary"),
            vmem_limit_bytes=vmem_limit),
    )(z, x, b_scaled, rb_half)

    return jnp.sum(partials) + const


def nmf_log_likelihood_ref(x, z, N, W):
    """Pure-JAX reference mirroring the PyTorch module exactly."""
    A = z[:, :N][:, :, None]             # [S, N, 1]
    B = z[:, N:N + W][:, None, :]        # [S, 1, W]
    sigma2 = z[:, -1]                    # [S], broadcasts along the last axis
    AB = A * B                           # [S, N, W]  (== bmm)
    logp = (-0.5 * (x - AB) ** 2 / sigma2
            - 0.5 * jnp.log(sigma2)
            - 0.5 * _LOG_2PI)
    return jnp.sum(logp)


if __name__ == "__main__":
    loglik = jax.jit(nmf_log_likelihood, static_argnames=("N", "W", "n_blk"))
    keys = jax.random.split(jax.random.PRNGKey(0), 6)

    # ---- Case 1: S == W (the module's broadcast requires S in {1, W}). ----
    N, W = 400, 8
    S = W
    z_main = jax.random.normal(keys[0], (S, N + W), dtype=jnp.float32)
    sigma2_col = jnp.abs(jax.random.normal(keys[1], (S, 1), dtype=jnp.float32)) + 0.5
    z = jnp.concatenate([z_main, sigma2_col], axis=1)        # [S, N+W+1]
    x = jax.random.normal(keys[2], (N, W), dtype=jnp.float32)

    ref = nmf_log_likelihood_ref(x, z, N, W)
    out_default = jax.block_until_ready(loglik(x, z, N=N, W=W))           # 1 block
    out_tiled = jax.block_until_ready(loglik(x, z, N=N, W=W, n_blk=128))  # 4 blocks, 2-core, ragged
    for name, out in (("default", out_default), ("n_blk=128", out_tiled)):
        if not jnp.allclose(out, ref, rtol=1e-3, atol=1e-1):
            raise AssertionError(f"[{name}] mismatch: kernel={out} ref={ref}")

    # ---- Case 2: S == 1 (scalar sigma2 broadcast along W). ----
    N1, W1, S1 = 96, 8, 1
    z1_main = jax.random.normal(keys[3], (S1, N1 + W1), dtype=jnp.float32)
    s1_col = jnp.abs(jax.random.normal(keys[4], (S1, 1), dtype=jnp.float32)) + 0.5
    z1 = jnp.concatenate([z1_main, s1_col], axis=1)
    x1 = jax.random.normal(keys[5], (N1, W1), dtype=jnp.float32)
    out1 = jax.block_until_ready(loglik(x1, z1, N=N1, W=W1))
    ref1 = nmf_log_likelihood_ref(x1, z1, N1, W1)
    if not jnp.allclose(out1, ref1, rtol=1e-3, atol=1e-1):
        raise AssertionError(f"[S=1] mismatch: kernel={out1} ref={ref1}")

    print("KERNEL_OK")
</pallas_src>

<mosaic_0001>
module attributes {stable_mosaic.version = 11 : i64} {
  func.func @_nmf_loglik_kernel(%arg0: i32, %arg1: i32, %arg2: memref<8x512xf32, #tpu.memory_space<vmem>>, %arg3: memref<512x8xf32, #tpu.memory_space<vmem>>, %arg4: memref<8x8xf32, #tpu.memory_space<vmem>>, %arg5: memref<8x1xf32, #tpu.memory_space<vmem>>, %arg6: memref<1x1x1xf32, #tpu.memory_space<vmem>>, %arg7: memref<8x512xf32, #tpu.memory_space<vmem>>) attributes {dimension_semantics = [#tpu.dimension_semantics<parallel>, #tpu.dimension_semantics<arbitrary>], iteration_bounds = array<i64: 1, 1>, scalar_prefetch = 0 : i64, scratch_operands = 1 : i64, tpu.core_type = #tpu.core_type<tc>, window_params = [{transform_indices = @transform_0, window_bounds = array<i64: 8, 512>}, {transform_indices = @transform_1, window_bounds = array<i64: 512, 8>}, {pipeline_mode = #tpu.pipeline_mode<synchronous>, transform_indices = @transform_2, window_bounds = array<i64: 8, 8>}, {pipeline_mode = #tpu.pipeline_mode<synchronous>, transform_indices = @transform_3, window_bounds = array<i64: 8, 1>}, {transform_indices = @transform_4, window_bounds = array<i64: 1, 1, 1>}]} {
    %c0_i32 = arith.constant 0 : i32
    %0 = arith.cmpi eq, %arg1, %c0_i32 : i32
    %1 = arith.extui %0 : i1 to i32
    %c0_i32_0 = arith.constant 0 : i32
    %2 = arith.cmpi ne, %1, %c0_i32_0 : i32
    scf.if %2 {
      %cst_15 = arith.constant 0.000000e+00 : f32
      %28 = vector.broadcast %cst_15 : f32 to vector<8x512xf32>
      %c0_16 = arith.constant 0 : index
      %c0_17 = arith.constant 0 : index
      %29 = vector.load %arg7[%c0_16, %c0_17] : memref<8x512xf32, #tpu.memory_space<vmem>>, vector<8x512xf32>
      tpu.vector_store %arg7[%c0_16, %c0_17], %28 {strides = array<i32>} : memref<8x512xf32, #tpu.memory_space<vmem>>, vector<8x512xf32>,
    } else {
    }
    %c0 = arith.constant 0 : index
    %c0_1 = arith.constant 0 : index
    %3 = vector.load %arg2[%c0, %c0_1] : memref<8x512xf32, #tpu.memory_space<vmem>>, vector<8x512xf32>
    %c0_2 = arith.constant 0 : index
    %c0_3 = arith.constant 0 : index
    %4 = vector.load %arg4[%c0_2, %c0_3] : memref<8x8xf32, #tpu.memory_space<vmem>>, vector<8x8xf32>
    %c0_4 = arith.constant 0 : index
    %c0_5 = arith.constant 0 : index
    %5 = vector.load %arg3[%c0_4, %c0_5] : memref<512x8xf32, #tpu.memory_space<vmem>>, vector<512x8xf32>
    %cst = arith.constant dense<0.000000e+00> : vector<8x512xf32>
    %6 = tpu.matmul %4, %5, %cst {dimension_numbers = #tpu.dot_dimension_numbers<[1], [1], [0], [0], [0, 0, 1, 0], [], []>, precision = #tpu.contract_precision<fp32>} : vector<8x8xf32>, vector<512x8xf32>, vector<8x512xf32> -> vector<8x512xf32>
    %c0_6 = arith.constant 0 : index
    %c0_7 = arith.constant 0 : index
    %7 = vector.load %arg5[%c0_6, %c0_7] : memref<8x1xf32, #tpu.memory_space<vmem>>, vector<8x1xf32>
    %8 = vector.broadcast %7 : vector<8x1xf32> to vector<8x512xf32>
    %9 = arith.mulf %3, %8 : vector<8x512xf32>
    %10 = arith.subf %6, %9 : vector<8x512xf32>
    %11 = arith.mulf %3, %10 : vector<8x512xf32>
    %c1_i32 = arith.constant 1 : i32
    %12 = arith.muli %arg0, %c1_i32 : i32
    %13 = arith.addi %12, %arg1 : i32
    %c512_i32 = arith.constant 512 : i32
    %14 = arith.muli %13, %c512_i32 : i32
    %15 = tpu.iota {dimensions = array<i32: 1>} : vector<8x512xi32>
    %16 = vector.broadcast %14 : i32 to vector<8x512xi32>
    %17 = arith.addi %16, %15 : vector<8x512xi32>
    %c400_i32 = arith.constant 400 : i32
    %18 = vector.broadcast %c400_i32 : i32 to vector<8x512xi32>
    %19 = arith.cmpi slt, %17, %18 : vector<8x512xi32>
    %cst_8 = arith.constant 0.000000e+00 : f32
    %20 = vector.broadcast %cst_8 : f32 to vector<8x512xf32>
    %21 = arith.select %19, %11, %20 : vector<8x512xi1>, vector<8x512xf32>
    %c0_9 = arith.constant 0 : index
    %c0_10 = arith.constant 0 : index
    %22 = vector.load %arg7[%c0_9, %c0_10] : memref<8x512xf32, #tpu.memory_space<vmem>>, vector<8x512xf32>
    %23 = arith.addf %22, %21 : vector<8x512xf32>
    %c0_11 = arith.constant 0 : index
    %c0_12 = arith.constant 0 : index
    %24 = vector.load %arg7[%c0_11, %c0_12] : memref<8x512xf32, #tpu.memory_space<vmem>>, vector<8x512xf32>
    tpu.vector_store %arg7[%c0_11, %c0_12], %23 {strides = array<i32>} : memref<8x512xf32, #tpu.memory_space<vmem>>, vector<8x512xf32>,
    %c0_i32_13 = arith.constant 0 : i32
    %25 = arith.cmpi eq, %arg1, %c0_i32_13 : i32
    %26 = arith.extui %25 : i1 to i32
    %c0_i32_14 = arith.constant 0 : i32
    %27 = arith.cmpi ne, %26, %c0_i32_14 : i32
    scf.if %27 {
      %c0_15 = arith.constant 0 : index
      %c0_16 = arith.constant 0 : index
      %28 = vector.load %arg7[%c0_15, %c0_16] : memref<8x512xf32, #tpu.memory_space<vmem>>, vector<8x512xf32>
      %29 = vector.shape_cast %28 : vector<8x512xf32> to vector<1x8x512xf32>
      %cst_17 = arith.constant dense<0.000000e+00> : vector<1xf32>
      %30 = vector.multi_reduction <add>, %29, %cst_17 [1, 2] : vector<1x8x512xf32> to vector<1xf32>
      %31 = vector.shape_cast %30 : vector<1xf32> to vector<1x1x1xf32>
      %32 = vector.extract %31[0, 0, 0] : f32 from vector<1x1x1xf32>
      %33 = vector.broadcast %32 : f32 to vector<1x1xf32>
      %34 = vector.shape_cast %33 : vector<1x1xf32> to vector<1x1x1xf32>
      %c0_18 = arith.constant 0 : index
      %c0_19 = arith.constant 0 : index
      %c0_20 = arith.constant 0 : index
      %35 = vector.load %arg6[%c0_18, %c0_19, %c0_20] : memref<1x1x1xf32, #tpu.memory_space<vmem>>, vector<1x1x1xf32>
      tpu.vector_store %arg6[%c0_18, %c0_19, %c0_20], %34 {strides = array<i32>} : memref<1x1x1xf32, #tpu.memory_space<vmem>>, vector<1x1x1xf32>,
    } else {
    }
    return
  }
  func.func @transform_0(%arg0: i32, %arg1: i32) -> (i32, i32) {
    %c1_i32 = arith.constant 1 : i32
    %0 = arith.muli %arg0, %c1_i32 : i32
    %1 = arith.addi %0, %arg1 : i32
    %c0_i32 = arith.constant 0 : i32
    %c0_i32_0 = arith.constant 0 : i32
    return %c0_i32, %1 : i32, i32
  }
  func.func @transform_1(%arg0: i32, %arg1: i32) -> (i32, i32) {
    %c1_i32 = arith.constant 1 : i32
    %0 = arith.muli %arg0, %c1_i32 : i32
    %1 = arith.addi %0, %arg1 : i32
    %c0_i32 = arith.constant 0 : i32
    %c0_i32_0 = arith.constant 0 : i32
    return %1, %c0_i32 : i32, i32
  }
  func.func @transform_2(%arg0: i32, %arg1: i32) -> (i32, i32) {
    %c0_i32 = arith.constant 0 : i32
    %c0_i32_0 = arith.constant 0 : i32
    %c0_i32_1 = arith.constant 0 : i32
    return %c0_i32, %c0_i32_0 : i32, i32
  }
  func.func @transform_3(%arg0: i32, %arg1: i32) -> (i32, i32) {
    %c0_i32 = arith.constant 0 : i32
    %c0_i32_0 = arith.constant 0 : i32
    %c0_i32_1 = arith.constant 0 : i32
    return %c0_i32, %c0_i32_0 : i32, i32
  }
  func.func @transform_4(%arg0: i32, %arg1: i32) -> (i32, i32, i32) {
    %c0_i32 = arith.constant 0 : i32
    %c0_i32_0 = arith.constant 0 : i32
    %c0_i32_1 = arith.constant 0 : i32
    return %arg0, %c0_i32, %c0_i32_0 : i32, i32, i32
  }
}

</mosaic_0001>

<bundles_post_ra>
// kernel: nmf_log_likelihood.1
= control target key start
LH: loop header
LB: loop body
LE: loop exit
PB: predicated region body
PF: predicated region fallthrough
CT: control target
= control target key end

     0   :  { %vm149_vm0 = vcmask 64512   ;;  %s3889_s0 = inlined_call_operand.vmem [shape: f32[8,409], index: 0, kind: input, shape index: {}]   ;;  %s3890_s1 = inlined_call_operand.vmem [shape: f32[400,8], index: 1, kind: input, shape index: {}]   ;;  %s3891_s2 = inlined_call_operand.vmem [shape: f32[8,8], index: 2, kind: input, shape index: {}]   ;;  %s3892_s3 = inlined_call_operand.vmem [shape: f32[8,1], index: 3, kind: input, shape index: {}]   ;;  %s3893_s4 = inlined_call_operand.hbm [shape: f32[1,1,1], index: 4, kind: output, shape index: {}]  }
   0x1   :  { %v116_v0 = vld [vmem:[%s3890_s1 + $0xf8] sm:$0xff]  ;;  %v115_v2 = vld [vmem:[%s3890_s1 + $0xf0] sm:$0xff]  ;;  %v114_v7 = vld [vmem:[%s3890_s1 + $0xe8] sm:$0xff] }
   0x2   :  { %v100_v1 = vld [vmem:[%s3890_s1 + $0x78] sm:$0xff]  ;;  %v247_v3 = vsel %vm149_vm0, %v116_v0, 0  ;;  %v244_v5 = vsel %vm149_vm0, %v115_v2, 0  ;;  %v99_v6 = vld [vmem:[%s3890_s1 + $0x70] sm:$0xff]  ;;  %v98_v8 = vld [vmem:[%s3890_s1 + $0x68] sm:$0xff]  ;;  %v241_v16 = vsel %vm149_vm0, %v114_v7, 0 }
   0x3   :  { %v199_v4 = vsel %vm149_vm0, %v100_v1, 0  ;;  %v2636_v9 = vand.u32 4294901760, %v247_v3  ;;  %v2640_v11 = vand.u32 4294901760, %v244_v5  ;;  %v196_v12 = vsel %vm149_vm0, %v99_v6, 0  ;;  %v113_v13 = vld [vmem:[%s3890_s1 + $0xe0] sm:$0xff]  ;;  %v112_v19 = vld [vmem:[%s3890_s1 + $0xd8] sm:$0xff] }
   0x4   :  { %v2638_v10 = vand.u32 4294901760, %v199_v4  ;;  %v97_v14 = vld [vmem:[%s3890_s1 + $0x60] sm:$0xff]  ;;  %v2649_v15 = vand.u32 4294901760, %v196_v12  ;;  %v193_v17 = vsel %vm149_vm0, %v98_v8, 0  ;;  %v238_v18 = vsel %vm149_vm0, %v113_v13, 0  ;;  %v96_v27 = vld [vmem:[%s3890_s1 + $0x58] sm:$0xff] }
   0x5   :  { %2153 = vmatprep.subr.mxu0 %v2636_v9  ;;  %v2658_v20 = vand.u32 4294901760, %v241_v16  ;;  %v2661_v21 = vsub.f32 %v247_v3, %v2636_v9  ;;  %v2663_v22 = vand.u32 4294901760, %v193_v17  ;;  %v2670_v24 = vsub.f32 %v244_v5, %v2640_v11  ;;  %v111_v36 = vld [vmem:[%s3890_s1 + $0xd0] sm:$0xff]  ;;  %v110_v50 = vld [vmem:[%s3890_s1 + $0xc8] sm:$0xff]  ;;  %v109_v60 = vld [vmem:[%s3890_s1 + $0xc0] sm:$0xff] }
   0x6   :  { %v2666_v23 = vsub.f32 %v199_v4, %v2638_v10  ;;  %2154 = vmatpush3.xpose.msra.mxu0 %v2638_v10  ;;  %v190_v25 = vsel %vm149_vm0, %v97_v14, 0  ;;  %v2674_v26 = vsub.f32 %v196_v12, %v2649_v15  ;;  %v2682_v30 = vand.u32 4294901760, %v238_v18  ;;  %v95_v45 = vld [vmem:[%s3890_s1 + $0x50] sm:$0xff]  ;;  %v94_v59 = vld [vmem:[%s3890_s1 + $0x48] sm:$0xff] }
   0x7   :  { %2155 = vmatprep.subr.mxu0 %v2640_v11  ;;  %v3910_v28 = vand.u32 4294901760, %v2661_v21  ;;  %v235_v31 = vsel %vm149_vm0, %v112_v19, 0  ;;  %v3907_v32 = vand.u32 4294901760, %v2670_v24  ;;  %v2686_v33 = vand.u32 4294901760, %v190_v25 }
   0x8   :  { %v3909_v29 = vand.u32 4294901760, %v2666_v23  ;;  %v3905_v34 = vand.u32 4294901760, %v2674_v26  ;;  %v2690_v35 = vsub.f32 %v241_v16, %v2658_v20  ;;  %v187_v39 = vsel %vm149_vm0, %v96_v27, 0 }
   0x9   :  { %v569_v37 = vsub.f32 %v2661_v21, %v3910_v28  ;;  %v2703_v40 = vsub.f32 %v193_v17, %v2663_v22  ;;  %v576_v41 = vsub.f32 %v2670_v24, %v3907_v32  ;;  %v2712_v43 = vand.u32 4294901760, %v235_v31 }
   0xa   :  { %v457_v38 = vsub.f32 %v2666_v23, %v3909_v29  ;;  %2156 = vmatpush3.xpose.msra.mxu0 %v2649_v15  ;;  %v464_v42 = vsub.f32 %v2674_v26, %v3905_v34  ;;  %v3904_v44 = vand.u32 4294901760, %v2690_v35  ;;  %v232_v49 = vsel %vm149_vm0, %v111_v36, 0 }
   0xb   :  { %2157 = vmatprep.subr.mxu0 %v2658_v20  ;;  %v570_v46 = vand.u32 4294901760, %v569_v37  ;;  %v3903_v48 = vand.u32 4294901760, %v2703_v40  ;;  %v577_v51 = vand.u32 4294901760, %v576_v41  ;;  %v2727_v54 = vand.u32 4294901760, %v187_v39 }
   0xc   :  { %v458_v47 = vand.u32 4294901760, %v457_v38  ;;  %v465_v52 = vand.u32 4294901760, %v464_v42  ;;  %v583_v53 = vsub.f32 %v2690_v35, %v3904_v44  ;;  %v2733_v56 = vsub.f32 %v238_v18, %v2682_v30 }
   0xd   :  { %2187 = vmatprep.subr.mxu1 %v570_v46  ;;  %v471_v55 = vsub.f32 %v2703_v40, %v3903_v48  ;;  %v184_v57 = vsel %vm149_vm0, %v95_v45, 0  ;;  %v2737_v58 = vsub.f32 %v190_v25, %v2686_v33 }
   0xe   :  { %9 = vsyncpa [#allocation4], 0  ;;  %2158 = vmatpush3.xpose.msra.mxu0 %v2663_v22  ;;  %2188 = vmatpush3.xpose.msra.mxu1 %v458_v47  ;;  %v584_v61 = vand.u32 4294901760, %v583_v53  ;;  %v2746_v62 = vand.u32 4294901760, %v232_v49  ;;  %v229_v63 = vsel %vm149_vm0, %v110_v50, 0  ;;  %v2750_v0 = vsub.f32 %v235_v31, %v2712_v43  ;;  %v93_v5 = vld [vmem:[%s3890_s1 + $0x40] sm:$0xff] }
   0xf   :  { %2159 = vmatprep.subr.mxu0 %v2682_v30  ;;  %2189 = vmatprep.subr.mxu1 %v577_v51  ;;  %v472_v1 = vand.u32 4294901760, %v471_v55  ;;  %v3901_v2 = vand.u32 4294901760, %v2733_v56  ;;  %v2754_v3 = vand.u32 4294901760, %v184_v57  ;;  %v3900_v4 = vand.u32 4294901760, %v2737_v58  ;;  %v108_v18 = vld [vmem:[%s3890_s1 + $0xb8] sm:$0xff]  ;;  %v107_v46 = vld [vmem:[%s3890_s1 + $0xb0] sm:$0xff] }
  0x10   :  { %v3898_v6 = vand.u32 4294901760, %v2750_v0  ;;  %v181_v7 = vsel %vm149_vm0, %v94_v59, 0  ;;  %v2763_v8 = vsub.f32 %v187_v39, %v2727_v54  ;;  %v226_v12 = vsel %vm149_vm0, %v109_v60, 0  ;;  %v92_v39 = vld [vmem:[%s3890_s1 + $0x38] sm:$0xff]  ;;  %v91_v59 = vld [vmem:[%s3890_s1 + $0x30] sm:$0xff] }
  0x11   :  { %v590_v13 = vsub.f32 %v2733_v56, %v3901_v2  ;;  %v478_v14 = vsub.f32 %v2737_v58, %v3900_v4  ;;  %v2772_v16 = vand.u32 4294901760, %v229_v63  ;;  %v2774_v17 = vand.u32 4294901760, %v181_v7 }
  0x12   :  { %2160 = vmatpush3.xpose.msra.mxu0 %v2686_v33  ;;  %2190 = vmatpush3.xpose.msra.mxu1 %v465_v52  ;;  %v597_v19 = vsub.f32 %v2750_v0, %v3898_v6  ;;  %v3897_v25 = vand.u32 4294901760, %v2763_v8  ;;  %v2785_v27 = vsub.f32 %v232_v49, %v2746_v62  ;;  %v178_v31 = vsel %vm149_vm0, %v93_v5, 0  ;;  %v106_v5 = vld [vmem:[%s3890_s1 + $0xa8] sm:$0xff] }
  0x13   :  { %2161 = vmatprep.subr.mxu0 %v2712_v43  ;;  %2191 = vmatprep.subr.mxu1 %v584_v61  ;;  %v591_v36 = vand.u32 4294901760, %v590_v13  ;;  %v2789_v37 = vand.u32 4294901760, %v226_v12  ;;  %v2792_v38 = vsub.f32 %v184_v57, %v2754_v3  ;;  %v479_v41 = vand.u32 4294901760, %v478_v14 }
  0x14   :  { %v3895_v42 = vand.u32 4294901760, %v2785_v27  ;;  %v223_v45 = vsel %vm149_vm0, %v108_v18, 0  ;;  %v485_v47 = vsub.f32 %v2763_v8, %v3897_v25  ;;  %v2805_v49 = vand.u32 4294901760, %v178_v31 }
  0x15   :  { %v3894_v50 = vand.u32 4294901760, %v2792_v38  ;;  %v2809_v51 = vsub.f32 %v229_v63, %v2772_v16  ;;  %v598_v52 = vand.u32 4294901760, %v597_v19  ;;  %v2812_v53 = vand.u32 4294901760, %v223_v45 }
  0x16   :  { %4019 = vst [vmem:[#allocation6_spill] sm:$0xff] %v2805_v49  ;;  %2162 = vmatpush3.xpose.msra.mxu0 %v2727_v54  ;;  %2192 = vmatpush3.xpose.msra.mxu1 %v472_v1  ;;  %v175_v55 = vsel %vm149_vm0, %v92_v39, 0  ;;  %v2816_v57 = vsub.f32 %v181_v7, %v2774_v17  ;;  %v604_v60 = vsub.f32 %v2785_v27, %v3895_v42  ;;  %v220_v63 = vsel %vm149_vm0, %v107_v46, 0  ;;  %v90_v46 = vld [vmem:[%s3890_s1 + $0x28] sm:$0xff] }
  0x17   :  { %4020 = vst [vmem:[#allocation7_spill] sm:$0xff] %v2812_v53  ;;  %2163 = vmatprep.subr.mxu0 %v2746_v62  ;;  %2193 = vmatprep.subr.mxu1 %v591_v36  ;;  %v3896_v61 = vand.u32 4294901760, %v2809_v51  ;;  %v2828_v1 = vsub.f32 %v226_v12, %v2789_v37  ;;  %v486_v7 = vand.u32 4294901760, %v485_v47  ;;  %v492_v13 = vsub.f32 %v2792_v38, %v3894_v50 }
  0x18   :  { %v3899_v14 = vand.u32 4294901760, %v2816_v57  ;;  %v172_v18 = vsel %vm149_vm0, %v91_v59, 0  ;;  %v2839_v19 = vand.u32 4294901760, %v175_v55  ;;  %v2841_v12 = vand.u32 4294901760, %v220_v63 }
  0x19   :  { %v2844_v36 = vsub.f32 %v178_v31, %v2805_v49  ;;  %v217_v39 = vsel %vm149_vm0, %v106_v5, 0  ;;  %v605_v47 = vand.u32 4294901760, %v604_v60  ;;  %v3902_v59 = vand.u32 4294901760, %v2828_v1  ;;  %v105_v31 = vld [vmem:[%s3890_s1 + $0xa0] sm:$0xff] }
  0x1a   :  { %2164 = vmatpush3.xpose.msra.mxu0 %v2754_v3  ;;  %2194 = vmatpush3.xpose.msra.mxu1 %v479_v41  ;;  %4021 = vst [vmem:[#allocation8_spill] sm:$0xff] %v2839_v19  ;;  %4022 = vst [vmem:[#allocation9_spill] sm:$0xff] %v2841_v12  ;;  %v611_v41 = vsub.f32 %v2809_v51, %v3896_v61  ;;  %v2856_v50 = vsub.f32 %v223_v45, %v2812_v53  ;;  %v2861_v5 = vand.u32 4294901760, %v172_v18  ;;  %vm2125_vm2 = vcmask 0  }
  0x1b   :  { %2165 = vmatprep.subr.mxu0 %v2772_v16  ;;  %2195 = vmatprep.subr.mxu1 %v598_v52  ;;  %v493_v42 = vand.u32 4294901760, %v492_v13  ;;  %v499_v52 = vsub.f32 %v2816_v57, %v3899_v14  ;;  %v2866_v60 = vand.u32 4294901760, %v217_v39  ;;  %v169_v61 = vsel %vm149_vm0, %v90_v46, 0 }
  0x1c   :  { %4023 = vst [vmem:[#allocation10_spill] sm:$0xff] %v2861_v5  ;;  %v3906_v45 = vand.u32 4294901760, %v2844_v36  ;;  %v2872_v25 = vsub.f32 %v175_v55, %v2839_v19  ;;  %v214_v6 = vsel %vm149_vm0, %v105_v31, 0  ;;  %v2876_v13 = vsub.f32 %v220_v63, %v2841_v12  ;;  %v89_v55 = vld [vmem:[%s3890_s1 + $0x20] sm:$0xff] }
  0x1d   :  { %4024 = vst [vmem:[#allocation11_spill] sm:$0xff] %v2866_v60  ;;  %v612_v14 = vand.u32 4294901760, %v611_v41  ;;  %v618_v46 = vsub.f32 %v2828_v1, %v3902_v59  ;;  %v2886_v4 = vand.u32 4294901760, %v169_v61  ;;  %v2889_v31 = vsub.f32 %v172_v18, %v2861_v5 }
  0x1e   :  { %2166 = vmatpush3.xpose.msra.mxu0 %v2774_v17  ;;  %2196 = vmatpush3.xpose.msra.mxu1 %v486_v7  ;;  %v3908_v7 = vand.u32 4294901760, %v2856_v50  ;;  %v500_v63 = vand.u32 4294901760, %v499_v52  ;;  %v2891_v2 = vand.u32 4294901760, %v214_v6  ;;  %v2897_v41 = vsub.f32 %v217_v39, %v2866_v60 }
  0x1f   :  { %2167 = vmatprep.subr.mxu0 %v2789_v37  ;;  %2197 = vmatprep.subr.mxu1 %v605_v47  ;;  %4025 = vst [vmem:[#allocation12_spill] sm:$0xff] %v2886_v4  ;;  %4026 = vst [vmem:[#allocation13_spill] sm:$0xff] %v2889_v31  ;;  %v104_v47 = vld [vmem:[%s3890_s1 + $0x98] sm:$0xff]  ;;  %v506_v59 = vsub.f32 %v2844_v36, %v3906_v45  ;;  %v3911_v18 = vand.u32 4294901760, %v2872_v25  ;;  %v3912_v52 = vand.u32 4294901760, %v2876_v13  ;;  %v166_v48 = vsel %vm149_vm0, %v89_v55, 0 }
  0x20   :  { %4027 = vst [vmem:[#allocation14_spill] sm:$0xff] %v2891_v2  ;;  %4028 = vst [vmem:[#allocation15_spill] sm:$0xff] %v2897_v41  ;;  %v619_v44 = vand.u32 4294901760, %v618_v46  ;;  %v625_v39 = vsub.f32 %v2856_v50, %v3908_v7  ;;  %v211_v34 = vsel %vm149_vm0, %v104_v47, 0  ;;  %v88_v45 = vld [vmem:[%s3890_s1 + $0x18] sm:$0xff]  ;;  %v2916_v32 = vsub.f32 %v169_v61, %v2886_v4  ;;  %v103_v46 = vld [vmem:[%s3890_s1 + $0x90] sm:$0xff] }
  0x21   :  { %v2918_v55 = vand.u32 4294901760, %v166_v48  ;;  %v2925_v7 = vsub.f32 %v214_v6, %v2891_v2  ;;  %v507_v47 = vand.u32 4294901760, %v506_v59  ;;  %v513_v61 = vsub.f32 %v2872_v25, %v3911_v18 }
  0x22   :  { %2168 = vmatpush3.xpose.msra.mxu0 %v2805_v49  ;;  %2198 = vmatpush3.xpose.msra.mxu1 %v493_v42  ;;  %v3915_v42 = vand.u32 4294901760, %v2889_v31  ;;  %4029 = vst [vmem:[#allocation16_spill] sm:$0xff] %v2916_v32  ;;  %v632_v29 = vsub.f32 %v2876_v13, %v3912_v52  ;;  %v626_v28 = vand.u32 4294901760, %v625_v39  ;;  %v163_v6 = vsel %vm149_vm0, %v88_v45, 0  ;;  %v87_v52 = vld [vmem:[%s3890_s1 + $0x10] sm:$0xff] }
  0x23   :  { %2169 = vmatprep.subr.mxu0 %v2812_v53  ;;  %2199 = vmatprep.subr.mxu1 %v612_v14  ;;  %4030 = vst [vmem:[#allocation17_spill] sm:$0xff] %v2918_v55  ;;  %4031 = vst [vmem:[#allocation18_spill] sm:$0xff] %v2925_v7  ;;  %v2935_v14 = vand.u32 4294901760, %v211_v34  ;;  %v208_v18 = vsel %vm149_vm0, %v103_v46, 0  ;;  %v4033_v39 = vand.u32 4294901760, %v2897_v41  ;;  %v84_v46 = vld [vmem:[%s3891_s2] sm:$0xff] }
  0x24   :  { %v520_v59 = vsub.f32 %v2889_v31, %v3915_v42  ;;  %v2954_v42 = vsub.f32 %v166_v48, %v2918_v55  ;;  %v2960_v53 = vand.u32 4294901760, %v163_v6 }
  0x25   :  { %4032 = vst [vmem:[#allocation19_spill] sm:$0xff] %v2935_v14  ;;  %v639_v45 = vsub.f32 %v2897_v41, %v4033_v39  ;;  %v2963_v39 = vand.u32 4294901760, %v208_v18  ;;  %v2968_v41 = vsub.f32 %v211_v34, %v2935_v14 }
  0x26   :  { %2170 = vmatpush3.xpose.msra.mxu0 %v2839_v19  ;;  %2200 = vmatpush3.xpose.msra.mxu1 %v500_v63  ;;  %4034 = vst [vmem:[#allocation20_spill] sm:$0xff] %v2954_v42  ;;  %v514_v63 = vand.u32 4294901760, %v513_v61  ;;  %v633_v19 = vand.u32 4294901760, %v632_v29  ;;  %4035 = vst [vmem:[#allocation21_spill] sm:$0xff] %v2960_v53  ;;  %v521_v61 = vand.u32 4294901760, %v520_v59  ;;  %v4038_v29 = vand.u32 4294901760, %v2916_v32 }
  0x27   :  { %2171 = vmatprep.subr.mxu0 %v2841_v12  ;;  %2201 = vmatprep.subr.mxu1 %v619_v44  ;;  %v102_v44 = vld [vmem:[%s3890_s1 + $0x88] sm:$0xff]  ;;  %4036 = vst [vmem:[#allocation22_spill] sm:$0xff] %v2963_v39  ;;  %v160_v12 = vsel %vm149_vm0, %v87_v52, 0  ;;  %4037 = vst [vmem:[#allocation23_spill] sm:$0xff] %v2968_v41  ;;  %v151_v52 = vsel %vm149_vm0, %v84_v46, 0  ;;  %v2993_v46 = vsub.f32 %v163_v6, %v2960_v53 }
  0x28   :  { %v205_v48 = vsel %vm149_vm0, %v102_v44, 0  ;;  %v4039_v44 = vand.u32 4294901760, %v2925_v7  ;;  %v2984_v31 = vand.u32 4294901760, %v151_v52  ;;  %v2987_v59 = vand.u32 4294901760, %v160_v12 }
  0x29   :  { %v2999_v49 = vsub.f32 %v208_v18, %v2963_v39 }
  0x2a   :  { %2172 = vmatpush3.xpose.msra.mxu0 %v2861_v5  ;;  %2202 = vmatpush3.xpose.msra.mxu1 %v507_v47  ;;  %v86_v47 = vld [vmem:[%s3890_s1 + $0x8] sm:$0xff]  ;;  %v527_v5 = vsub.f32 %v2916_v32, %v4038_v29  ;;  %v646_v34 = vsub.f32 %v2925_v7, %v4039_v44  ;;  %v2989_v29 = vand.u32 4294901760, %v205_v48 }
  0x2b   :  { %2173 = vmatprep.subr.mxu0 %v2866_v60  ;;  %2203 = vmatprep.subr.mxu1 %v626_v28  ;;  %v101_v28 = vld [vmem:[%s3890_s1 + $0x80] sm:$0xff]  ;;  %v640_v60 = vand.u32 4294901760, %v639_v45  ;;  %v157_v32 = vsel %vm149_vm0, %v86_v47, 0 }
  0x2c   :  { %4040 = vst [vmem:[#allocation24_spill] sm:$0xff] %v2989_v29  ;;  %v202_v44 = vsel %vm149_vm0, %v101_v28, 0  ;;  %v528_v47 = vand.u32 4294901760, %v527_v5  ;;  %2219 = vmatprep.mubr.f32.mxu1 %v2984_v31  ;;  %v647_v6 = vand.u32 4294901760, %v646_v34  ;;  %v3022_v34 = vsub.f32 %v160_v12, %v2987_v59 }
  0x2d   :  { %v3032_v28 = vsub.f32 %v205_v48, %v2989_v29  ;;  %v4044_v12 = vand.u32 4294901760, %v2993_v46 }
  0x2e   :  { %2174 = vmatpush3.xpose.msra.mxu0 %v2886_v4  ;;  %2204 = vmatpush3.xpose.msra.mxu1 %v514_v63  ;;  %v85_v63 = vld [vmem:[%s3890_s1] sm:$0xff]  ;;  %v3005_v4 = vsub.f32 %v151_v52, %v2984_v31  ;;  %v3018_v52 = vand.u32 4294901760, %v202_v44 }
  0x2f   :  { %2175 = vmatprep.subr.mxu0 %v2891_v2  ;;  %2205 = vmatprep.subr.mxu1 %v633_v19  ;;  %v4041_v19 = vand.u32 4294901760, %v2954_v42  ;;  %v3011_v2 = vand.u32 4294901760, %v157_v32  ;;  %v154_v5 = vsel %vm149_vm0, %v85_v63, 0 }
  0x30   :  { %v3014_v18 = vand.u32 4294901760, %v3005_v4 }
  0x31   :  { %v534_v45 = vsub.f32 %v2954_v42, %v4041_v19  ;;  %v4042_v19 = vand.u32 4294901760, %v2968_v41  ;;  %v3044_v7 = vsub.f32 %v157_v32, %v3011_v2 }
  0x32   :  { %2176 = vmatpush3.xpose.msra.mxu0 %v2918_v55  ;;  %2206 = vmatpush3.xpose.msra.mxu1 %v521_v61  ;;  %v445_v61 = vsub.f32 %v3005_v4, %v3014_v18 }
  0x33   :  { %2177 = vmatprep.subr.mxu0 %v2935_v14  ;;  %2207 = vmatprep.subr.mxu1 %v640_v60  ;;  %v653_v42 = vsub.f32 %v2968_v41, %v4042_v19  ;;  %v535_v55 = vand.u32 4294901760, %v534_v45  ;;  %v541_v60 = vsub.f32 %v2993_v46, %v4044_v12  ;;  %v3040_v14 = vand.u32 4294901760, %v154_v5  ;;  %4045 = vst [vmem:[#allocation26_spill] sm:$0xff] %v3044_v7 }
  0x34   :  { %v3034_v63 = vand.u32 4294901760, %v445_v61  ;;  %v3946_v19 = vand.u32 4294901760, %v3022_v34  ;;  %v4046_v45 = vand.u32 4294901760, %v2999_v49 }
  0x35   :  { %v654_v48 = vand.u32 4294901760, %v653_v42  ;;  %v542_v32 = vand.u32 4294901760, %v541_v60  ;;  %v3950_v42 = vand.u32 4294901760, %v3044_v7  ;;  %v3061_v12 = vsub.f32 %v154_v5, %v3040_v14 }
  0x36   :  { %4043 = vst [vmem:[#allocation25_spill] sm:$0xff] %v3034_v63  ;;  %2178 = vmatpush3.xpose.msra.mxu0 %v2960_v53  ;;  %2208 = vmatpush3.xpose.msra.mxu1 %v528_v47  ;;  %v660_v61 = vsub.f32 %v2999_v49, %v4046_v45  ;;  %v3947_v47 = vand.u32 4294901760, %v3032_v28  ;;  %v3052_v53 = vsub.f32 %v202_v44, %v3018_v52 }
  0x37   :  { %2179 = vmatprep.subr.mxu0 %v2963_v39  ;;  %2209 = vmatprep.subr.mxu1 %v647_v6  ;;  %v548_v6 = vsub.f32 %v3022_v34, %v3946_v19  ;;  %v555_v19 = vsub.f32 %v3044_v7, %v3950_v42  ;;  %v3948_v5 = vand.u32 4294901760, %v3061_v12  ;;  %v4058_v42 = vld [vmem:[#allocation12_spill] sm:$0xff] }
  0x38   :  { %2185 = vmatprep.mubr.f32.mxu0 %v3034_v63  ;;  %v661_v44 = vand.u32 4294901760, %v660_v61  ;;  %v667_v45 = vsub.f32 %v3032_v28, %v3947_v47 }
  0x39   :  { %v549_v60 = vand.u32 4294901760, %v548_v6  ;;  %v556_v47 = vand.u32 4294901760, %v555_v19  ;;  %v4047_v19 = vld [vmem:[#allocation13_spill] sm:$0xff] }
  0x3a   :  { %2180 = vmatpush3.xpose.msra.mxu0 %v2987_v59  ;;  %2210 = vmatpush3.xpose.msra.mxu1 %v535_v55  ;;  %v3949_v55 = vand.u32 4294901760, %v3052_v53 }
  0x3b   :  { %2181 = vmatprep.subr.mxu0 %v2989_v29  ;;  %2211 = vmatprep.subr.mxu1 %v654_v48  ;;  %v668_v48 = vand.u32 4294901760, %v667_v45  ;;  %v4049_v45 = vld [vmem:[#allocation15_spill] sm:$0xff] }
  0x3c   :  { %v674_v61 = vsub.f32 %v3052_v53, %v3949_v55  ;;  %v4057_v55 = vld [vmem:[#allocation11_spill] sm:$0xff] }
  0x3e   :  { %2182 = vmatpush3.xpose.msra.mxu0 %v3011_v2  ;;  %2212 = vmatpush3.xpose.msra.mxu1 %v542_v32  ;;  %v562_v32 = vsub.f32 %v3061_v12, %v3948_v5  ;;  %v675_v6 = vand.u32 4294901760, %v674_v61  ;;  %v4052_v61 = vld [vmem:[#allocation8_spill] sm:$0xff]  ;;  %v4056_v5 = vld [vmem:[#allocation10_spill] sm:$0xff] }
  0x3f   :  { %2183 = vmatprep.subr.mxu0 %v3018_v52  ;;  %2213 = vmatprep.subr.mxu1 %v661_v44 }
  0x40   :  { %v563_v44 = vand.u32 4294901760, %v562_v32  ;;  %v4053_v32 = vld [vmem:[#allocation18_spill] sm:$0xff] }
  0x42   :  { %2184 = vmatpush3.xpose.msra.mxu0 %v3040_v14  ;;  %2214 = vmatpush3.xpose.msra.mxu1 %v549_v60  ;;  %v4050_v60 = vld [vmem:[#allocation7_spill] sm:$0xff] }
  0x43   :  { %2215 = vmatprep.subr.mxu1 %v668_v48  ;;  %2221 = vmatprep.subr.mxu0 %v2661_v21  ;;  %v4051_v48 = vld [vmem:[#allocation16_spill] sm:$0xff] }
  0x45   :  { %2186 = vmatmul.mubr.f32.vlgmr.msra.gmra.mxu0 %v3034_v63  ;;  %v4059_v63 = vld [vmem:[#allocation14_spill] sm:$0xff] }
  0x46   :  { %2216 = vmatpush3.xpose.msra.mxu1 %v556_v47  ;;  %2222 = vmatpush3.xpose.msra.mxu0 %v2666_v23  ;;  %v4048_v47 = vld [vmem:[#allocation6_spill] sm:$0xff] }
  0x47   :  { %2217 = vmatprep.subr.mxu1 %v675_v6  ;;  %2223 = vmatprep.subr.mxu0 %v2670_v24  ;;  %v4054_v6 = vld [vmem:[#allocation9_spill] sm:$0xff] }
  0x48   :  { %2253 = vmatprep.mubr.f32.mxu0 %v3005_v4 }
  0x4a   :  { %2218 = vmatpush3.xpose.msra.mxu1 %v563_v44  ;;  %2224 = vmatpush3.xpose.msra.mxu0 %v2674_v26  ;;  %v4055_v44 = vld [vmem:[#allocation20_spill] sm:$0xff] }
  0x4b   :  { %2225 = vmatprep.subr.mxu0 %v2690_v35  ;;  %2255 = vmatprep.subr.mxu1 %v2636_v9 }
  0x4d   :  { %2220 = vmatmul.mubr.f32.vlgmr.msra.gmra.mxu1 %v2984_v31 }
  0x4e   :  { %2226 = vmatpush3.xpose.msra.mxu0 %v2703_v40  ;;  %2256 = vmatpush3.xpose.msra.mxu1 %v2638_v10 }
  0x4f   :  { %2227 = vmatprep.subr.mxu0 %v2733_v56  ;;  %2257 = vmatprep.subr.mxu1 %v2640_v11 }
  0x50   :  { %2287 = vmatprep.mubr.f32.mxu1 %v3014_v18 }
  0x52   :  { %2228 = vmatpush3.xpose.msra.mxu0 %v2737_v58  ;;  %2258 = vmatpush3.xpose.msra.mxu1 %v2649_v15 }
  0x53   :  { %2229 = vmatprep.subr.mxu0 %v2750_v0  ;;  %2259 = vmatprep.subr.mxu1 %v2658_v20 }
  0x56   :  { %2230 = vmatpush3.xpose.msra.mxu0 %v2763_v8  ;;  %2260 = vmatpush3.xpose.msra.mxu1 %v2663_v22 }
  0x57   :  { %2231 = vmatprep.subr.mxu0 %v2785_v27  ;;  %2261 = vmatprep.subr.mxu1 %v2682_v30 }
  0x5a   :  { %2232 = vmatpush3.xpose.msra.mxu0 %v2792_v38  ;;  %2262 = vmatpush3.xpose.msra.mxu1 %v2686_v33 }
  0x5b   :  { %2233 = vmatprep.subr.mxu0 %v2809_v51  ;;  %2263 = vmatprep.subr.mxu1 %v2712_v43 }
  0x5e   :  { %2234 = vmatpush3.xpose.msra.mxu0 %v2816_v57  ;;  %2264 = vmatpush3.xpose.msra.mxu1 %v2727_v54 }
  0x5f   :  { %2235 = vmatprep.subr.mxu0 %v2828_v1  ;;  %2265 = vmatprep.subr.mxu1 %v2746_v62 }
  0x62   :  { %2236 = vmatpush3.xpose.msra.mxu0 %v2844_v36  ;;  %2266 = vmatpush3.xpose.msra.mxu1 %v2754_v3 }
  0x63   :  { %2237 = vmatprep.subr.mxu0 %v2856_v50  ;;  %2267 = vmatprep.subr.mxu1 %v2772_v16 }
  0x66   :  { %2238 = vmatpush3.xpose.msra.mxu0 %v2872_v25  ;;  %2268 = vmatpush3.xpose.msra.mxu1 %v2774_v17 }
  0x67   :  { %2239 = vmatprep.subr.mxu0 %v2876_v13  ;;  %2269 = vmatprep.subr.mxu1 %v2789_v37 }
  0x6a   :  { %2240 = vmatpush3.xpose.msra.mxu0 %v4047_v19  ;;  %2270 = vmatpush3.xpose.msra.mxu1 %v4048_v47 }
  0x6b   :  { %2241 = vmatprep.subr.mxu0 %v4049_v45  ;;  %2271 = vmatprep.subr.mxu1 %v4050_v60 }
  0x6e   :  { %2242 = vmatpush3.xpose.msra.mxu0 %v4051_v48  ;;  %2272 = vmatpush3.xpose.msra.mxu1 %v4052_v61 }
  0x6f   :  { %2243 = vmatprep.subr.mxu0 %v4053_v32  ;;  %2273 = vmatprep.subr.mxu1 %v4054_v6  ;;  %v4060_v32 = vld [vmem:[#allocation17_spill] sm:$0xff] }
  0x72   :  { %2244 = vmatpush3.xpose.msra.mxu0 %v4055_v44  ;;  %2274 = vmatpush3.xpose.msra.mxu1 %v4056_v5  ;;  %v4061_v44 = vld [vmem:[#allocation19_spill] sm:$0xff] }
  0x73   :  { %2245 = vmatprep.subr.mxu0 %v2968_v41  ;;  %2275 = vmatprep.subr.mxu1 %v4057_v55  ;;  %v4062_v41 = vld [vmem:[#allocation21_spill] sm:$0xff] }
  0x76   :  { %2246 = vmatpush3.xpose.msra.mxu0 %v2993_v46  ;;  %2276 = vmatpush3.xpose.msra.mxu1 %v4058_v42 }
  0x77   :  { %2247 = vmatprep.subr.mxu0 %v2999_v49  ;;  %2277 = vmatprep.subr.mxu1 %v4059_v63 }
  0x7a   :  { %2248 = vmatpush3.xpose.msra.mxu0 %v3022_v34  ;;  %2278 = vmatpush3.xpose.msra.mxu1 %v4060_v32  ;;  %v4063_v32 = vand.u32 4294901760, %v2661_v21  ;;  %v4067_v21 = vand.u32 4294901760, %v2690_v35  ;;  %v4070_v35 = vand.u32 4294901760, %v2737_v58  ;;  %v4082_v58 = vand.u32 4294901760, %v4047_v19 }
  0x7b   :  { %2249 = vmatprep.subr.mxu0 %v3032_v28  ;;  %2279 = vmatprep.subr.mxu1 %v4061_v44  ;;  %v4095_v19 = vand.u32 4294901760, %v3032_v28 }
  0x7e   :  { %2250 = vmatpush3.xpose.msra.mxu0 %v3044_v7  ;;  %2280 = vmatpush3.xpose.msra.mxu1 %v4062_v41  ;;  %v4064_v7 = vand.u32 4294901760, %v2666_v23  ;;  %v4068_v23 = vand.u32 4294901760, %v2703_v40  ;;  %v4073_v40 = vand.u32 4294901760, %v2785_v27  ;;  %v4089_v27 = vld [vmem:[#allocation23_spill] sm:$0xff] }
  0x7f   :  { %2251 = vmatprep.subr.mxu0 %v3052_v53  ;;  %2281 = vmatprep.subr.mxu1 %v2963_v39  ;;  %v4065_v39 = vand.u32 4294901760, %v2670_v24  ;;  %v4069_v24 = vand.u32 4294901760, %v2733_v56  ;;  %v4074_v56 = vand.u32 4294901760, %v2792_v38 }
  0x82   :  { %2252 = vmatpush3.xpose.msra.mxu0 %v3061_v12  ;;  %2282 = vmatpush3.xpose.msra.mxu1 %v2987_v59 }
  0x83   :  { %2283 = vmatprep.subr.mxu1 %v2989_v29  ;;  %2289 = vmatprep.subr.mxu0 %v4063_v32  ;;  %v4066_v29 = vand.u32 4294901760, %v2674_v26  ;;  %v2588_v26 = vmov 0  }
  0x84   :  { %2565 = vset.pattern.permute.xlu0 %v2588_v26  ;;  %v129_v26 = vld [vmem:[%s3890_s1 + $0x160] sm:$0xff] }
  0x85   :  { %2254 = vmatmul.mubr.f32.vlgmr.msra.gmra.mxu0 %v3005_v4 }
  0x86   :  { %2284 = vmatpush3.xpose.msra.mxu1 %v3011_v2  ;;  %2290 = vmatpush3.xpose.msra.mxu0 %v4064_v7 }
  0x87   :  { %2285 = vmatprep.subr.mxu1 %v3018_v52  ;;  %2291 = vmatprep.subr.mxu0 %v4065_v39  ;;  %v131_v39 = vld [vmem:[%s3890_s1 + $0x170] sm:$0xff] }
  0x88   :  { %2321 = vmatprep.mubr.f32.mxu0 %v2984_v31 }
  0x8a   :  { %2286 = vmatpush3.xpose.msra.mxu1 %v3040_v14  ;;  %2292 = vmatpush3.xpose.msra.mxu0 %v4066_v29  ;;  %v146_v29 = vld [vmem:[%s3890_s1 + $0x1e8] sm:$0xff] }
  0x8b   :  { %2293 = vmatprep.subr.mxu0 %v4067_v21  ;;  %2323 = vmatprep.subr.mxu1 %v2636_v9  ;;  %v2055_v9 = vld [vmem:[%s3892_s3] sm:$0xff] }
  0x8c   :  { %2058 = vperm.xlu0 %2565, %v2055_v9  }
  0x8d   :  { %2288 = vmatmul.mubr.f32.vlgmr.msra.gmra.mxu1 %v3014_v18 }
  0x8e   :  { %2294 = vmatpush3.xpose.msra.mxu0 %v4068_v23  ;;  %2324 = vmatpush3.xpose.msra.mxu1 %v2638_v10  ;;  %v4071_v10 = vand.u32 4294901760, %v2750_v0  ;;  %v4084_v0 = vand.u32 4294901760, %v4051_v48  ;;  %v145_v48 = vld [vmem:[%s3890_s1 + $0x1e0] sm:$0xff]  ;;  %v4098_v23 = vand.u32 4294901760, %v3052_v53  ;;  %v144_v53 = vld [vmem:[%s3890_s1 + $0x1d8] sm:$0xff] }
  0x8f   :  { %2295 = vmatprep.subr.mxu0 %v4069_v24  ;;  %2325 = vmatprep.subr.mxu1 %v2640_v11  ;;  %v4072_v11 = vand.u32 4294901760, %v2763_v8  ;;  %v4099_v24 = vld [vmem:[#allocation22_spill] sm:$0xff] }
  0x90   :  { %2355 = vmatprep.mubr.f32.mxu1 %v2984_v31 }
  0x92   :  { %2296 = vmatpush3.xpose.msra.mxu0 %v4070_v35  ;;  %2326 = vmatpush3.xpose.msra.mxu1 %v2649_v15  ;;  %v4075_v15 = vand.u32 4294901760, %v2809_v51  ;;  %v147_v51 = vld [vmem:[%s3890_s1 + $0x1f0] sm:$0xff] }
  0x93   :  { %2297 = vmatprep.subr.mxu0 %v4071_v10  ;;  %2327 = vmatprep.subr.mxu1 %v2658_v20  ;;  %v4076_v20 = vand.u32 4294901760, %v2816_v57  ;;  %v4091_v57 = vand.u32 4294901760, %v2993_v46  ;;  %v340_v7 = vsel %vm149_vm0, %v147_v51, 0  ;;  %v142_v51 = vld [vmem:[%s3890_s1 + $0x1c8] sm:$0xff] }
  0x96   :  { %2298 = vmatpush3.xpose.msra.mxu0 %v4072_v11  ;;  %2328 = vmatpush3.xpose.msra.mxu1 %v2663_v22  ;;  %v4077_v22 = vand.u32 4294901760, %v2828_v1  ;;  %v4100_v11 = vand.u32 4294901760, %v3061_v12  ;;  %v331_v12 = vsel %vm149_vm0, %v144_v53, 0 }
  0x97   :  { %2299 = vmatprep.subr.mxu0 %v4073_v40  ;;  %2329 = vmatprep.subr.mxu1 %v2682_v30  ;;  %v4078_v30 = vand.u32 4294901760, %v2844_v36 }
  0x9a   :  { %2300 = vmatpush3.xpose.msra.mxu0 %v4074_v56  ;;  %2330 = vmatpush3.xpose.msra.mxu1 %v2686_v33  ;;  %v4079_v33 = vand.u32 4294901760, %v2856_v50  ;;  %v132_v50 = vld [vmem:[%s3890_s1 + $0x178] sm:$0xff] }
  0x9b   :  { %2301 = vmatprep.subr.mxu0 %v4075_v15  ;;  %2331 = vmatprep.subr.mxu1 %v2712_v43  ;;  %v4080_v43 = vand.u32 4294901760, %v2872_v25  ;;  %v295_v36 = vsel %vm149_vm0, %v132_v50, 0  ;;  %v286_v15 = vsel %vm149_vm0, %v129_v26, 0 }
  0x9c   :  { %v3253_v46 = vand.u32 4294901760, %v295_v36 }
  0x9e   :  { %2302 = vmatpush3.xpose.msra.mxu0 %v4076_v20  ;;  %2332 = vmatpush3.xpose.msra.mxu1 %v2727_v54  ;;  %v4081_v54 = vand.u32 4294901760, %v2876_v13  ;;  %v4092_v13 = vand.u32 4294901760, %v2999_v49  ;;  %v3258_v49 = vand.u32 4294901760, %v340_v7 }
  0x9f   :  { %2303 = vmatprep.subr.mxu0 %v4077_v22  ;;  %2333 = vmatprep.subr.mxu1 %v2746_v62  ;;  %v4083_v62 = vand.u32 4294901760, %v4049_v45  ;;  %v3272_v45 = vsub.f32 %v295_v36, %v3253_v46  ;;  %v4101_v22 = vld [vmem:[#allocation24_spill] sm:$0xff] }
  0xa0   :  { %v3287_v21 = vsub.f32 %v340_v7, %v3258_v49 }
  0xa1   :  { %v3970_v10 = vand.u32 4294901760, %v3272_v45 }
  0xa2   :  { %2304 = vmatpush3.xpose.msra.mxu0 %v4078_v30  ;;  %2334 = vmatpush3.xpose.msra.mxu1 %v2754_v3  ;;  %v4085_v3 = vld [vmem:[#allocation18_spill] sm:$0xff]  ;;  %v3969_v56 = vand.u32 4294901760, %v3287_v21 }
  0xa3   :  { %2305 = vmatprep.subr.mxu0 %v4079_v33  ;;  %2335 = vmatprep.subr.mxu1 %v2772_v16  ;;  %v4086_v8 = vand.u32 4294901760, %v4085_v3  ;;  %v148_v16 = vld [vmem:[%s3890_s1 + $0x1f8] sm:$0xff]  ;;  %v143_v33 = vld [vmem:[%s3890_s1 + $0x1d0] sm:$0xff] }
  0xa4   :  { %v343_v38 = vsel %vm149_vm0, %v148_v16, 0  ;;  %v1431_v3 = vsub.f32 %v3287_v21, %v3969_v56  ;;  %v3345_v16 = vand.u32 4294901760, %v331_v12 }
  0xa5   :  { %v3240_v1 = vand.u32 4294901760, %v343_v38 }
  0xa6   :  { %2306 = vmatpush3.xpose.msra.mxu0 %v4080_v43  ;;  %2336 = vmatpush3.xpose.msra.mxu1 %v2774_v17  ;;  %v4087_v17 = vld [vmem:[#allocation20_spill] sm:$0xff] }
  0xa7   :  { %2307 = vmatprep.subr.mxu0 %v4081_v54  ;;  %2337 = vmatprep.subr.mxu1 %v2789_v37  ;;  %v4088_v25 = vand.u32 4294901760, %v4087_v17  ;;  %v4090_v37 = vand.u32 4294901760, %v4089_v27  ;;  %v3331_v54 = vand.u32 4294901760, %v286_v15  ;;  %v328_v17 = vsel %vm149_vm0, %v143_v33, 0  ;;  %v127_v27 = vld [vmem:[%s3890_s1 + $0x150] sm:$0xff]  ;;  %v140_v33 = vld [vmem:[%s3890_s1 + $0x1b8] sm:$0xff] }
  0xa8   :  { %v280_v7 = vsel %vm149_vm0, %v127_v27, 0 }
  0xaa   :  { %2308 = vmatpush3.xpose.msra.mxu0 %v4082_v58  ;;  %2338 = vmatpush3.xpose.msra.mxu1 %v4048_v47  ;;  %v337_v47 = vsel %vm149_vm0, %v146_v29, 0 }
  0xab   :  { %2309 = vmatprep.subr.mxu0 %v4083_v62  ;;  %2339 = vmatprep.subr.mxu1 %v4050_v60  ;;  %v3282_v32 = vand.u32 4294901760, %v337_v47 }
  0xad   :  { %v3314_v20 = vsub.f32 %v337_v47, %v3282_v32 }
  0xae   :  { %2310 = vmatpush3.xpose.msra.mxu0 %v4084_v0  ;;  %2340 = vmatpush3.xpose.msra.mxu1 %v4052_v61  ;;  %v4096_v61 = vld [vmem:[#allocation26_spill] sm:$0xff]  ;;  %v1312_v0 = vsub.f32 %v3272_v45, %v3970_v10 }
  0xaf   :  { %2311 = vmatprep.subr.mxu0 %v4086_v8  ;;  %2341 = vmatprep.subr.mxu1 %v4054_v6  ;;  %v4097_v28 = vand.u32 4294901760, %v4096_v61  ;;  %v3966_v8 = vand.u32 4294901760, %v3314_v20 }
  0xb1   :  { %v1438_v29 = vsub.f32 %v3314_v20, %v3966_v8 }
  0xb2   :  { %2312 = vmatpush3.xpose.msra.mxu0 %v4088_v25  ;;  %2342 = vmatpush3.xpose.msra.mxu1 %v4056_v5  ;;  %v3262_v5 = vsub.f32 %v343_v38, %v3240_v1  ;;  %v3357_v38 = vsub.f32 %v286_v15, %v3331_v54 }
  0xb3   :  { %2313 = vmatprep.subr.mxu0 %v4090_v37  ;;  %2343 = vmatprep.subr.mxu1 %v4057_v55  ;;  %v4094_v55 = vld [vmem:[#allocation17_spill] sm:$0xff]  ;;  %v1439_v26 = vand.u32 4294901760, %v1438_v29 }
  0xb4   :  { %v3971_v6 = vand.u32 4294901760, %v3262_v5  ;;  %v4102_v37 = vld [vmem:[#allocation25_spill] sm:$0xff]  ;;  %v3961_v61 = vand.u32 4294901760, %v3357_v38 }
  0xb6   :  { %2314 = vmatpush3.xpose.msra.mxu0 %v4091_v57  ;;  %2344 = vmatpush3.xpose.msra.mxu1 %v4058_v42  ;;  %v4093_v42 = vand.u32 4294901760, %v3022_v34  ;;  %v130_v34 = vld [vmem:[%s3890_s1 + $0x168] sm:$0xff]  ;;  %v1424_v40 = vsub.f32 %v3262_v5, %v3971_v6  ;;  %v1313_v57 = vand.u32 4294901760, %v1312_v0 }
  0xb7   :  { %2315 = vmatprep.subr.mxu0 %v4092_v13  ;;  %2345 = vmatprep.subr.mxu1 %v4059_v63  ;;  %v292_v63 = vsel %vm149_vm0, %v131_v39, 0  ;;  %v3370_v13 = vand.u32 4294901760, %v328_v17  ;;  %v1432_v39 = vand.u32 4294901760, %v1431_v3 }
  0xb8   :  { %v3274_v60 = vand.u32 4294901760, %v292_v63  ;;  %v1425_v62 = vand.u32 4294901760, %v1424_v40  ;;  %v125_v40 = vld [vmem:[%s3890_s1 + $0x140] sm:$0xff] }
  0xba   :  { %2316 = vmatpush3.xpose.msra.mxu0 %v4093_v42  ;;  %2346 = vmatpush3.xpose.msra.mxu1 %v4094_v55  ;;  %v3297_v9 = vsub.f32 %v292_v63, %v3274_v60  ;;  %v126_v55 = vld [vmem:[%s3890_s1 + $0x148] sm:$0xff]  ;;  %v141_v63 = vld [vmem:[%s3890_s1 + $0x1c0] sm:$0xff] }
  0xbb   :  { %2317 = vmatprep.subr.mxu0 %v4095_v19  ;;  %2347 = vmatprep.subr.mxu1 %v4061_v44  ;;  %v289_v44 = vsel %vm149_vm0, %v130_v34, 0  ;;  %v325_v19 = vsel %vm149_vm0, %v142_v51, 0  ;;  %v319_v51 = vsel %vm149_vm0, %v140_v33, 0 }
  0xbc   :  { %v3299_v35 = vand.u32 4294901760, %v289_v44  ;;  %v3968_v58 = vand.u32 4294901760, %v3297_v9  ;;  %v3408_v53 = vand.u32 4294901760, %v325_v19 }
  0xbe   :  { %2318 = vmatpush3.xpose.msra.mxu0 %v4097_v28  ;;  %2348 = vmatpush3.xpose.msra.mxu1 %v4062_v41  ;;  %v334_v41 = vsel %vm149_vm0, %v145_v48, 0  ;;  %v3329_v43 = vsub.f32 %v289_v44, %v3299_v35  ;;  %v3392_v48 = vand.u32 4294901760, %v280_v7  ;;  %v277_v44 = vsel %vm149_vm0, %v126_v55, 0  ;;  %v139_v55 = vld [vmem:[%s3890_s1 + $0x1b0] sm:$0xff] }
  0xbf   :  { %2319 = vmatprep.subr.mxu0 %v4098_v23  ;;  %2349 = vmatprep.subr.mxu1 %v4099_v24  ;;  %v3318_v30 = vand.u32 4294901760, %v334_v41  ;;  %v322_v23 = vsel %vm149_vm0, %v141_v63, 0  ;;  %v3402_v24 = vsub.f32 %v328_v17, %v3370_v13 }
  0xc0   :  { %v3964_v50 = vand.u32 4294901760, %v3329_v43 }
  0xc1   :  { %v3350_v25 = vsub.f32 %v334_v41, %v3318_v30  ;;  %v3957_v3 = vand.u32 4294901760, %v3402_v24 }
  0xc2   :  { %2320 = vmatpush3.xpose.msra.mxu0 %v4100_v11  ;;  %2350 = vmatpush3.xpose.msra.mxu1 %v2987_v59  ;;  %v128_v59 = vld [vmem:[%s3890_s1 + $0x158] sm:$0xff]  ;;  %v1326_v34 = vsub.f32 %v3329_v43, %v3964_v50 }
  0xc3   :  { %2351 = vmatprep.subr.mxu1 %v4101_v22  ;;  %2357 = vmatprep.subr.mxu0 %v3240_v1  ;;  %v3963_v42 = vand.u32 4294901760, %v3350_v25  ;;  %v3416_v22 = vsub.f32 %v280_v7, %v3392_v48 }
  0xc4   :  { %v1327_v15 = vand.u32 4294901760, %v1326_v34  ;;  %v1459_v34 = vsub.f32 %v3402_v24, %v3957_v3 }
  0xc5   :  { %2322 = vmatmul.mubr.f32.vlgmr.msra.gmra.mxu0 %v2984_v31  ;;  %v1445_v41 = vsub.f32 %v3350_v25, %v3963_v42  ;;  %v3959_v29 = vand.u32 4294901760, %v3416_v22 }
  0xc6   :  { %2352 = vmatpush3.xpose.msra.mxu1 %v3011_v2  ;;  %2358 = vmatpush3.xpose.msra.mxu0 %v3253_v46  ;;  %v283_v2 = vsel %vm149_vm0, %v128_v59, 0  ;;  %v3420_v59 = vand.u32 4294901760, %v322_v23  ;;  %v1460_v3 = vand.u32 4294901760, %v1459_v34 }
  0xc7   :  { %2353 = vmatprep.subr.mxu1 %v3018_v52  ;;  %2359 = vmatprep.subr.mxu0 %v3258_v49  ;;  %v1319_v52 = vsub.f32 %v3297_v9, %v3968_v58  ;;  %v3368_v36 = vand.u32 4294901760, %v283_v2  ;;  %v1446_v17 = vand.u32 4294901760, %v1445_v41 }
  0xc8   :  { %2389 = vmatprep.mubr.f32.mxu0 %v4102_v37  ;;  %4103 = vst [vmem:[#allocation13_spill] sm:$0xff] %v3420_v59  ;;  %v3453_v63 = vsub.f32 %v322_v23, %v3420_v59 }
  0xc9   :  { %v1320_v47 = vand.u32 4294901760, %v1319_v52  ;;  %v3397_v28 = vsub.f32 %v283_v2, %v3368_v36  ;;  %v274_v2 = vsel %vm149_vm0, %v125_v40, 0  ;;  %v3437_v52 = vsub.f32 %v325_v19, %v3408_v53 }
  0xca   :  { %2354 = vmatpush3.xpose.msra.mxu1 %v3040_v14  ;;  %2360 = vmatpush3.xpose.msra.mxu0 %v3274_v60  ;;  %v3379_v14 = vsub.f32 %v331_v12, %v3345_v16  ;;  %v3418_v12 = vand.u32 4294901760, %v277_v44  ;;  %v316_v40 = vsel %vm149_vm0, %v139_v55, 0 }
  0xcb   :  { %2361 = vmatprep.subr.mxu0 %v3282_v32  ;;  %2391 = vmatprep.subr.mxu1 %v1425_v62  ;;  %v1333_v62 = vsub.f32 %v3357_v38, %v3961_v61  ;;  %v3958_v0 = vand.u32 4294901760, %v3397_v28  ;;  %v3962_v23 = vand.u32 4294901760, %v3437_v52 }
  0xcc   :  { %v3960_v11 = vand.u32 4294901760, %v3379_v14  ;;  %v3444_v7 = vsub.f32 %v277_v44, %v3418_v12 }
  0xcd   :  { %2356 = vmatmul.mubr.f32.vlgmr.msra.gmra.mxu1 %v2984_v31  ;;  %v1334_v19 = vand.u32 4294901760, %v1333_v62  ;;  %v1347_v62 = vsub.f32 %v3416_v22, %v3959_v29  ;;  %v3489_v29 = vand.u32 4294901760, %v316_v40 }
  0xce   :  { %2362 = vmatpush3.xpose.msra.mxu0 %v3299_v35  ;;  %2392 = vmatpush3.xpose.msra.mxu1 %v1313_v57  ;;  %v1452_v27 = vsub.f32 %v3379_v14, %v3960_v11  ;;  %v124_v57 = vld [vmem:[%s3890_s1 + $0x138] sm:$0xff] }
  0xcf   :  { %2363 = vmatprep.subr.mxu0 %v3318_v30  ;;  %2393 = vmatprep.subr.mxu1 %v1432_v39  ;;  %v3446_v39 = vand.u32 4294901760, %v274_v2  ;;  %v271_v41 = vsel %vm149_vm0, %v124_v57, 0  ;;  %v138_v57 = vld [vmem:[%s3890_s1 + $0x1a8] sm:$0xff]  ;;  %4107 = vst [vmem:[#allocation16_spill] sm:$0xff] %v3489_v29  ;;  %v3522_v58 = vsub.f32 %v316_v40, %v3489_v29 }
  0xd0   :  { %2423 = vmatprep.mubr.f32.mxu1 %v2984_v31  ;;  %v1453_v44 = vand.u32 4294901760, %v1452_v27  ;;  %v3967_v27 = vand.u32 4294901760, %v3453_v63  ;;  %v313_v34 = vsel %vm149_vm0, %v138_v57, 0 }
  0xd1   :  { %4104 = vst [vmem:[#allocation6_spill] sm:$0xff] %v3446_v39  ;;  %v3472_v33 = vsub.f32 %v274_v2, %v3446_v39  ;;  %v1466_v2 = vsub.f32 %v3437_v52, %v3962_v23  ;;  %v3518_v8 = vand.u32 4294901760, %v313_v34  ;;  %4110 = vst [vmem:[#allocation10_spill] sm:$0xff] %v3522_v58 }
  0xd2   :  { %2364 = vmatpush3.xpose.msra.mxu0 %v3331_v54  ;;  %2394 = vmatpush3.xpose.msra.mxu1 %v1320_v47  ;;  %v1340_v47 = vsub.f32 %v3397_v28, %v3958_v0  ;;  %v3483_v0 = vand.u32 4294901760, %v271_v41 }
  0xd3   :  { %2365 = vmatprep.subr.mxu0 %v3345_v16  ;;  %2395 = vmatprep.subr.mxu1 %v1439_v26  ;;  %v3463_v26 = vand.u32 4294901760, %v319_v51  ;;  %4109 = vst [vmem:[#allocation9_spill] sm:$0xff] %v3518_v8 }
  0xd4   :  { %v1341_v55 = vand.u32 4294901760, %v1340_v47  ;;  %4106 = vst [vmem:[#allocation7_spill] sm:$0xff] %v3483_v0  ;;  %v137_v47 = vld [vmem:[%s3890_s1 + $0x1a0] sm:$0xff]  ;;  %v3511_v42 = vsub.f32 %v271_v41, %v3483_v0 }
  0xd5   :  { %4105 = vst [vmem:[#allocation15_spill] sm:$0xff] %v3463_v26  ;;  %v3493_v61 = vsub.f32 %v319_v51, %v3463_v26  ;;  %v1473_v51 = vsub.f32 %v3453_v63, %v3967_v27  ;;  %v310_v57 = vsel %vm149_vm0, %v137_v47, 0  ;;  %v121_v41 = vld [vmem:[%s3890_s1 + $0x120] sm:$0xff] }
  0xd6   :  { %2366 = vmatpush3.xpose.msra.mxu0 %v3368_v36  ;;  %2396 = vmatpush3.xpose.msra.mxu1 %v1327_v15  ;;  %v123_v15 = vld [vmem:[%s3890_s1 + $0x130] sm:$0xff]  ;;  %v3535_v47 = vand.u32 4294901760, %v310_v57  ;;  %v3982_v10 = vand.u32 4294901760, %v3511_v42  ;;  %v262_v6 = vsel %vm149_vm0, %v121_v41, 0 }
  0xd7   :  { %2367 = vmatprep.subr.mxu0 %v3370_v13  ;;  %2397 = vmatprep.subr.mxu1 %v1446_v17  ;;  %v3965_v17 = vand.u32 4294901760, %v3444_v7  ;;  %v268_v11 = vsel %vm149_vm0, %v123_v15, 0  ;;  %v3972_v15 = vand.u32 4294901760, %v3472_v33  ;;  %v3975_v27 = vand.u32 4294901760, %v3493_v61 }
  0xd8   :  { %v3513_v50 = vand.u32 4294901760, %v268_v11  ;;  %4112 = vst [vmem:[#allocation12_spill] sm:$0xff] %v3535_v47  ;;  %v1474_v40 = vand.u32 4294901760, %v1473_v51  ;;  %v3558_v41 = vand.u32 4294901760, %v262_v6 }
  0xd9   :  { %v1354_v23 = vsub.f32 %v3444_v7, %v3965_v17  ;;  %v1467_v17 = vand.u32 4294901760, %v1466_v2 }
  0xda   :  { %2368 = vmatpush3.xpose.msra.mxu0 %v3392_v48  ;;  %2398 = vmatpush3.xpose.msra.mxu1 %v1334_v19  ;;  %v122_v19 = vld [vmem:[%s3890_s1 + $0x128] sm:$0xff]  ;;  %4108 = vst [vmem:[#allocation8_spill] sm:$0xff] %v3513_v50  ;;  %v3539_v56 = vsub.f32 %v268_v11, %v3513_v50  ;;  %v120_v11 = vld [vmem:[%s3890_s1 + $0x118] sm:$0xff]  ;;  %4116 = vst [vmem:[#allocation18_spill] sm:$0xff] %v3558_v41 }
  0xdb   :  { %2369 = vmatprep.subr.mxu0 %v3408_v53  ;;  %2399 = vmatprep.subr.mxu1 %v1453_v44  ;;  %v1348_v44 = vand.u32 4294901760, %v1347_v62  ;;  %v265_v62 = vsel %vm149_vm0, %v122_v19, 0  ;;  %v1355_v19 = vand.u32 4294901760, %v1354_v23  ;;  %v1480_v23 = vsub.f32 %v3493_v61, %v3975_v27 }
  0xdc   :  { %v3533_v2 = vand.u32 4294901760, %v265_v62  ;;  %4113 = vst [vmem:[#allocation14_spill] sm:$0xff] %v3539_v56  ;;  %v3564_v27 = vsub.f32 %v310_v57, %v3535_v47 }
  0xde   :  { %2370 = vmatpush3.xpose.msra.mxu0 %v3418_v12  ;;  %2400 = vmatpush3.xpose.msra.mxu1 %v1341_v55  ;;  %v136_v55 = vld [vmem:[%s3890_s1 + $0x198] sm:$0xff]  ;;  %4111 = vst [vmem:[#allocation11_spill] sm:$0xff] %v3533_v2  ;;  %v3556_v51 = vsub.f32 %v265_v62, %v3533_v2  ;;  %4117 = vst [vmem:[#allocation20_spill] sm:$0xff] %v3564_v27  ;;  %v3584_v62 = vsub.f32 %v262_v6, %v3558_v41 }
  0xdf   :  { %2371 = vmatprep.subr.mxu0 %v3420_v59  ;;  %2401 = vmatprep.subr.mxu1 %v1460_v3  ;;  %v1361_v3 = vsub.f32 %v3472_v33, %v3972_v15  ;;  %v4119_v59 = vand.u32 4294901760, %v3522_v58 }
  0xe0   :  { %4115 = vst [vmem:[#allocation21_spill] sm:$0xff] %v3556_v51  ;;  %4120 = vst [vmem:[#allocation17_spill] sm:$0xff] %v3584_v62 }
  0xe1   :  { %v1487_v57 = vsub.f32 %v3522_v58, %v4119_v59  ;;  %v134_v59 = vld [vmem:[%s3890_s1 + $0x188] sm:$0xff] }
  0xe2   :  { %2372 = vmatpush3.xpose.msra.mxu0 %v3446_v39  ;;  %2402 = vmatpush3.xpose.msra.mxu1 %v1348_v44  ;;  %v307_v39 = vsel %vm149_vm0, %v136_v55, 0  ;;  %v3550_v44 = vsub.f32 %v313_v34, %v3518_v8  ;;  %v1362_v34 = vand.u32 4294901760, %v1361_v3  ;;  %v1368_v55 = vsub.f32 %v3511_v42, %v3982_v10  ;;  %v119_v10 = vld [vmem:[%s3890_s1 + $0x110] sm:$0xff] }
  0xe3   :  { %2373 = vmatprep.subr.mxu0 %v3463_v26  ;;  %2403 = vmatprep.subr.mxu1 %v1467_v17  ;;  %v135_v17 = vld [vmem:[%s3890_s1 + $0x190] sm:$0xff]  ;;  %v3571_v15 = vand.u32 4294901760, %v307_v39  ;;  %v1481_v26 = vand.u32 4294901760, %v1480_v23  ;;  %v1488_v23 = vand.u32 4294901760, %v1487_v57 }
  0xe4   :  { %4114 = vst [vmem:[#allocation19_spill] sm:$0xff] %v3550_v44  ;;  %v304_v3 = vsel %vm149_vm0, %v135_v17, 0  ;;  %v4121_v17 = vand.u32 4294901760, %v3539_v56 }
  0xe5   :  { %4118 = vst [vmem:[#allocation23_spill] sm:$0xff] %v3571_v15  ;;  %v3598_v6 = vsub.f32 %v307_v39, %v3571_v15  ;;  %v4126_v39 = vand.u32 4294901760, %v3556_v51 }
  0xe6   :  { %2374 = vmatpush3.xpose.msra.mxu0 %v3483_v0  ;;  %2404 = vmatpush3.xpose.msra.mxu1 %v1355_v19  ;;  %v259_v19 = vsel %vm149_vm0, %v120_v11, 0  ;;  %v1369_v11 = vand.u32 4294901760, %v1368_v55  ;;  %v1375_v0 = vsub.f32 %v3539_v56, %v4121_v17  ;;  %v301_v55 = vsel %vm149_vm0, %v134_v59, 0  ;;  %v118_v17 = vld [vmem:[%s3890_s1 + $0x108] sm:$0xff] }
  0xe7   :  { %2375 = vmatprep.subr.mxu0 %v3489_v29  ;;  %2405 = vmatprep.subr.mxu1 %v1474_v40  ;;  %v3595_v29 = vand.u32 4294901760, %v259_v19  ;;  %4123 = vst [vmem:[#allocation22_spill] sm:$0xff] %v3598_v6  ;;  %v4124_v40 = vand.u32 4294901760, %v3550_v44 }
  0xe8   :  { %v1376_v59 = vand.u32 4294901760, %v1375_v0 }
  0xe9   :  { %4122 = vst [vmem:[#allocation26_spill] sm:$0xff] %v3595_v29  ;;  %v1494_v58 = vsub.f32 %v3550_v44, %v4124_v40  ;;  %v3623_v44 = vsub.f32 %v259_v19, %v3595_v29  ;;  %v3629_v40 = vand.u32 4294901760, %v301_v55  ;;  %v117_v19 = vld [vmem:[%s3890_s1 + $0x100] sm:$0xff] }
  0xea   :  { %2376 = vmatpush3.xpose.msra.mxu0 %v3513_v50  ;;  %2406 = vmatpush3.xpose.msra.mxu1 %v1362_v34  ;;  %v3604_v50 = vand.u32 4294901760, %v304_v3  ;;  %v256_v34 = vsel %vm149_vm0, %v119_v10, 0  ;;  %v133_v10 = vld [vmem:[%s3890_s1 + $0x180] sm:$0xff] }
  0xeb   :  { %2377 = vmatprep.subr.mxu0 %v3518_v8  ;;  %2407 = vmatprep.subr.mxu1 %v1481_v26  ;;  %v1382_v8 = vsub.f32 %v3556_v51, %v4126_v39  ;;  %v4127_v26 = vand.u32 4294901760, %v3564_v27  ;;  %v3625_v56 = vand.u32 4294901760, %v256_v34  ;;  %4128 = vst [vmem:[#allocation25_spill] sm:$0xff] %v3629_v40  ;;  %v298_v0 = vsel %vm149_vm0, %v133_v10, 0 }
  0xec   :  { %4125 = vst [vmem:[#allocation24_spill] sm:$0xff] %v3604_v50  ;;  %v3633_v51 = vsub.f32 %v304_v3, %v3604_v50  ;;  %v4129_v39 = vand.u32 4294901760, %v3584_v62  ;;  %v4130_v3 = vand.u32 4294901760, %v3598_v6 }
  0xed   :  { %v1501_v57 = vsub.f32 %v3564_v27, %v4127_v26  ;;  %v1495_v26 = vand.u32 4294901760, %v1494_v58  ;;  %v253_v27 = vsel %vm149_vm0, %v118_v17, 0  ;;  %v3644_v58 = vsub.f32 %v256_v34, %v3625_v56 }
  0xee   :  { %2378 = vmatpush3.xpose.msra.mxu0 %v3533_v2  ;;  %2408 = vmatpush3.xpose.msra.mxu1 %v1369_v11  ;;  %v1383_v11 = vand.u32 4294901760, %v1382_v8  ;;  %v1508_v17 = vsub.f32 %v3598_v6, %v4130_v3  ;;  %v3649_v10 = vand.u32 4294901760, %v253_v27  ;;  %v3653_v8 = vand.u32 4294901760, %v298_v0 }
  0xef   :  { %2379 = vmatprep.subr.mxu0 %v3535_v47  ;;  %2409 = vmatprep.subr.mxu1 %v1488_v23  ;;  %v1502_v2 = vand.u32 4294901760, %v1501_v57  ;;  %v1389_v23 = vsub.f32 %v3584_v62, %v4129_v39  ;;  %v4005_v47 = vand.u32 4294901760, %v3623_v44  ;;  %v3658_v34 = vsub.f32 %v301_v55, %v3629_v40 }
  0xf0   :  { %v3662_v3 = vsub.f32 %v253_v27, %v3649_v10  ;;  %v4008_v57 = vand.u32 4294901760, %v3644_v58  ;;  %v1509_v55 = vand.u32 4294901760, %v1508_v17  ;;  %v3676_v27 = vsub.f32 %v298_v0, %v3653_v8 }
  0xf1   :  { %v1390_v39 = vand.u32 4294901760, %v1389_v23 }
  0xf2   :  { %2380 = vmatpush3.xpose.msra.mxu0 %v3558_v41  ;;  %2410 = vmatpush3.xpose.msra.mxu1 %v1376_v59  ;;  %v250_v59 = vsel %vm149_vm0, %v117_v19, 0  ;;  %4131 = vst [vmem:[#allocation27_spill] sm:$0xff] %v3662_v3  ;;  %v4132_v19 = vand.u32 4294901760, %v3633_v51  ;;  %v4012_v17 = vand.u32 4294901760, %v3662_v3 }
  0xf3   :  { %2381 = vmatprep.subr.mxu0 %v3571_v15  ;;  %2411 = vmatprep.subr.mxu1 %v1495_v26  ;;  %v1396_v26 = vsub.f32 %v3623_v44, %v4005_v47  ;;  %v3667_v15 = vand.u32 4294901760, %v250_v59 }
  0xf4   :  { %v1515_v23 = vsub.f32 %v3633_v51, %v4132_v19 }
  0xf5   :  { %v1397_v47 = vand.u32 4294901760, %v1396_v26  ;;  %v1410_v26 = vsub.f32 %v3662_v3, %v4012_v17  ;;  %v4145_v17 = vld [vmem:[#allocation11_spill] sm:$0xff] }
  0xf6   :  { %2382 = vmatpush3.xpose.msra.mxu0 %v3595_v29  ;;  %2412 = vmatpush3.xpose.msra.mxu1 %v1383_v11  ;;  %v4009_v11 = vand.u32 4294901760, %v3658_v34  ;;  %v3680_v29 = vsub.f32 %v250_v59, %v3667_v15  ;;  %v1516_v19 = vand.u32 4294901760, %v1515_v23 }
  0xf7   :  { %2383 = vmatprep.subr.mxu0 %v3604_v50  ;;  %2413 = vmatprep.subr.mxu1 %v1502_v2  ;;  %v1403_v2 = vsub.f32 %v3644_v58, %v4008_v57 }
  0xf8   :  { %v1522_v0 = vsub.f32 %v3658_v34, %v4009_v11  ;;  %v4010_v57 = vand.u32 4294901760, %v3680_v29  ;;  %v1411_v11 = vand.u32 4294901760, %v1410_v26  ;;  %v4137_v26 = vld [vmem:[#allocation19_spill] sm:$0xff] }
  0xf9   :  { %v1404_v59 = vand.u32 4294901760, %v1403_v2 }
  0xfa   :  { %2384 = vmatpush3.xpose.msra.mxu0 %v3625_v56  ;;  %2414 = vmatpush3.xpose.msra.mxu1 %v1390_v39  ;;  %v4011_v39 = vand.u32 4294901760, %v3676_v27 }
  0xfb   :  { %2385 = vmatprep.subr.mxu0 %v3629_v40  ;;  %2415 = vmatprep.subr.mxu1 %v1509_v55  ;;  %v1523_v55 = vand.u32 4294901760, %v1522_v0  ;;  %v4135_v0 = vld [vmem:[#allocation14_spill] sm:$0xff] }
  0xfc   :  { %v1529_v23 = vsub.f32 %v3676_v27, %v4011_v39  ;;  %v4144_v39 = vld [vmem:[#allocation9_spill] sm:$0xff] }
  0xfe   :  { %2386 = vmatpush3.xpose.msra.mxu0 %v3649_v10  ;;  %2416 = vmatpush3.xpose.msra.mxu1 %v1397_v47  ;;  %v1417_v47 = vsub.f32 %v3680_v29, %v4010_v57  ;;  %v1530_v2 = vand.u32 4294901760, %v1529_v23  ;;  %v4139_v23 = vld [vmem:[#allocation21_spill] sm:$0xff]  ;;  %v4143_v57 = vld [vmem:[#allocation8_spill] sm:$0xff] }
  0xff   :  { %2387 = vmatprep.subr.mxu0 %v3653_v8  ;;  %2417 = vmatprep.subr.mxu1 %v1516_v19 }
 0x100   :  { %v1418_v19 = vand.u32 4294901760, %v1417_v47  ;;  %v4140_v47 = vld [vmem:[#allocation7_spill] sm:$0xff] }
 0x102   :  { %2388 = vmatpush3.xpose.msra.mxu0 %v3667_v15  ;;  %2418 = vmatpush3.xpose.msra.mxu1 %v1404_v59  ;;  %v4136_v59 = vld [vmem:[#allocation6_spill] sm:$0xff] }
 0x103   :  { %2419 = vmatprep.subr.mxu1 %v1523_v55  ;;  %2425 = vmatprep.subr.mxu0 %v3262_v5  ;;  %v4138_v55 = vld [vmem:[#allocation15_spill] sm:$0xff] }
 0x105   :  { %2390 = vmatmul.mubr.f32.vlgmr.msra.gmra.mxu0 %v4102_v37  ;;  %v4133_v37 = vld [vmem:[#allocation10_spill] sm:$0xff] }
 0x106   :  { %2420 = vmatpush3.xpose.msra.mxu1 %v1411_v11  ;;  %2426 = vmatpush3.xpose.msra.mxu0 %v3272_v45  ;;  %v4134_v11 = vld [vmem:[#allocation13_spill] sm:$0xff] }
 0x107   :  { %2421 = vmatprep.subr.mxu1 %v1530_v2  ;;  %2427 = vmatprep.subr.mxu0 %v3287_v21  ;;  %v4141_v2 = vld [vmem:[#allocation20_spill] sm:$0xff] }
 0x108   :  { %2457 = vmatprep.mubr.f32.mxu0 %v3005_v4 }
 0x10a   :  { %2422 = vmatpush3.xpose.msra.mxu1 %v1418_v19  ;;  %2428 = vmatpush3.xpose.msra.mxu0 %v3297_v9  ;;  %v4142_v19 = vld [vmem:[#allocation16_spill] sm:$0xff] }
 0x10b   :  { %2429 = vmatprep.subr.mxu0 %v3314_v20  ;;  %2459 = vmatprep.subr.mxu1 %v3240_v1 }
 0x10d   :  { %2424 = vmatmul.mubr.f32.vlgmr.msra.gmra.mxu1 %v2984_v31 }
 0x10e   :  { %2430 = vmatpush3.xpose.msra.mxu0 %v3329_v43  ;;  %2460 = vmatpush3.xpose.msra.mxu1 %v3253_v46 }
 0x10f   :  { %2431 = vmatprep.subr.mxu0 %v3350_v25  ;;  %2461 = vmatprep.subr.mxu1 %v3258_v49 }
 0x110   :  { %2491 = vmatprep.mubr.f32.mxu1 %v3014_v18 }
 0x112   :  { %2432 = vmatpush3.xpose.msra.mxu0 %v3357_v38  ;;  %2462 = vmatpush3.xpose.msra.mxu1 %v3274_v60 }
 0x113   :  { %2433 = vmatprep.subr.mxu0 %v3379_v14  ;;  %2463 = vmatprep.subr.mxu1 %v3282_v32 }
 0x116   :  { %2434 = vmatpush3.xpose.msra.mxu0 %v3397_v28  ;;  %2464 = vmatpush3.xpose.msra.mxu1 %v3299_v35 }
 0x117   :  { %2435 = vmatprep.subr.mxu0 %v3402_v24  ;;  %2465 = vmatprep.subr.mxu1 %v3318_v30 }
 0x11a   :  { %2436 = vmatpush3.xpose.msra.mxu0 %v3416_v22  ;;  %2466 = vmatpush3.xpose.msra.mxu1 %v3331_v54 }
 0x11b   :  { %2437 = vmatprep.subr.mxu0 %v3437_v52  ;;  %2467 = vmatprep.subr.mxu1 %v3345_v16 }
 0x11e   :  { %2438 = vmatpush3.xpose.msra.mxu0 %v3444_v7  ;;  %2468 = vmatpush3.xpose.msra.mxu1 %v3368_v36 }
 0x11f   :  { %2439 = vmatprep.subr.mxu0 %v3453_v63  ;;  %2469 = vmatprep.subr.mxu1 %v3370_v13 }
 0x122   :  { %2440 = vmatpush3.xpose.msra.mxu0 %v3472_v33  ;;  %2470 = vmatpush3.xpose.msra.mxu1 %v3392_v48 }
 0x123   :  { %2441 = vmatprep.subr.mxu0 %v3493_v61  ;;  %2471 = vmatprep.subr.mxu1 %v3408_v53 }
 0x126   :  { %2442 = vmatpush3.xpose.msra.mxu0 %v3511_v42  ;;  %2472 = vmatpush3.xpose.msra.mxu1 %v3418_v12 }
 0x127   :  { %2443 = vmatprep.subr.mxu0 %v4133_v37  ;;  %2473 = vmatprep.subr.mxu1 %v4134_v11 }
 0x12a   :  { %2444 = vmatpush3.xpose.msra.mxu0 %v4135_v0  ;;  %2474 = vmatpush3.xpose.msra.mxu1 %v4136_v59 }
 0x12b   :  { %2445 = vmatprep.subr.mxu0 %v4137_v26  ;;  %2475 = vmatprep.subr.mxu1 %v4138_v55 }
 0x12e   :  { %2446 = vmatpush3.xpose.msra.mxu0 %v4139_v23  ;;  %2476 = vmatpush3.xpose.msra.mxu1 %v4140_v47  ;;  %v4146_v23 = vld [vmem:[#allocation12_spill] sm:$0xff] }
 0x12f   :  { %2447 = vmatprep.subr.mxu0 %v4141_v2  ;;  %2477 = vmatprep.subr.mxu1 %v4142_v19 }
 0x132   :  { %2448 = vmatpush3.xpose.msra.mxu0 %v3584_v62  ;;  %2478 = vmatpush3.xpose.msra.mxu1 %v4143_v57  ;;  %v4147_v62 = vld [vmem:[#allocation23_spill] sm:$0xff] }
 0x133   :  { %2449 = vmatprep.subr.mxu0 %v3598_v6  ;;  %2479 = vmatprep.subr.mxu1 %v4144_v39  ;;  %v4148_v6 = vld [vmem:[#allocation26_spill] sm:$0xff] }
 0x136   :  { %2450 = vmatpush3.xpose.msra.mxu0 %v3623_v44  ;;  %2480 = vmatpush3.xpose.msra.mxu1 %v4145_v17 }
 0x137   :  { %2451 = vmatprep.subr.mxu0 %v3633_v51  ;;  %2481 = vmatprep.subr.mxu1 %v4146_v23 }
 0x13a   :  { %2452 = vmatpush3.xpose.msra.mxu0 %v3644_v58  ;;  %2482 = vmatpush3.xpose.msra.mxu1 %v3558_v41  ;;  %v4149_v41 = vand.u32 4294901760, %v3262_v5  ;;  %v4153_v5 = vand.u32 4294901760, %v3314_v20  ;;  %v4165_v20 = vand.u32 4294901760, %v3493_v61  ;;  %v4178_v61 = vand.u32 4294901760, %v3633_v51 }
 0x13b   :  { %2453 = vmatprep.subr.mxu0 %v3658_v34  ;;  %2483 = vmatprep.subr.mxu1 %v4147_v62 }
 0x13e   :  { %2454 = vmatpush3.xpose.msra.mxu0 %v3662_v3  ;;  %2484 = vmatpush3.xpose.msra.mxu1 %v4148_v6  ;;  %v4150_v3 = vand.u32 4294901760, %v3272_v45  ;;  %v4155_v45 = vand.u32 4294901760, %v3350_v25  ;;  %v4170_v25 = vld [vmem:[#allocation21_spill] sm:$0xff] }
 0x13f   :  { %2455 = vmatprep.subr.mxu0 %v3676_v27  ;;  %2485 = vmatprep.subr.mxu1 %v3604_v50  ;;  %v4151_v50 = vand.u32 4294901760, %v3287_v21  ;;  %v4156_v21 = vand.u32 4294901760, %v3357_v38  ;;  %v4171_v38 = vand.u32 4294901760, %v4170_v25 }
 0x142   :  { %2456 = vmatpush3.xpose.msra.mxu0 %v3680_v29  ;;  %2486 = vmatpush3.xpose.msra.mxu1 %v3625_v56 }
 0x143   :  { %2487 = vmatprep.subr.mxu1 %v3629_v40  ;;  %2493 = vmatprep.subr.mxu0 %v4149_v41  ;;  %v4152_v40 = vand.u32 4294901760, %v3297_v9  ;;  %v4163_v9 = vand.u32 4294901760, %v3453_v63  ;;  %v4186_v63 = vand.u32 4294901760, %v3680_v29  ;;  %v680_v41 = vpop.f32.mrf.mxu1 }
 0x145   :  { %2458 = vmatmul.mubr.f32.vlgmr.msra.gmra.mxu0 %v3005_v4  ;;  %v4154_v4 = vand.u32 4294901760, %v3329_v43  ;;  %v4167_v43 = vand.u32 4294901760, %v4133_v37  ;;  %v682_v29 = vpop.f32.mrf.mxu1 }
 0x146   :  { %2488 = vmatpush3.xpose.msra.mxu1 %v3649_v10  ;;  %2494 = vmatpush3.xpose.msra.mxu0 %v4150_v3 }
 0x147   :  { %2489 = vmatprep.subr.mxu1 %v3653_v8  ;;  %2495 = vmatprep.subr.mxu0 %v4151_v50  ;;  %v4172_v50 = vand.u32 4294901760, %v4141_v2 }
 0x148   :  { %2525 = vmatprep.mubr.f32.mxu0 %v2984_v31 }
 0x14a   :  { %2490 = vmatpush3.xpose.msra.mxu1 %v3667_v15  ;;  %2496 = vmatpush3.xpose.msra.mxu0 %v4152_v40 }
 0x14b   :  { %2497 = vmatprep.subr.mxu0 %v4153_v5  ;;  %2527 = vmatprep.subr.mxu1 %v3240_v1  ;;  %v4157_v1 = vand.u32 4294901760, %v3379_v14 }
 0x14d   :  { %2492 = vmatmul.mubr.f32.vlgmr.msra.gmra.mxu1 %v3014_v18  ;;  %v4158_v18 = vand.u32 4294901760, %v3397_v28  ;;  %v4179_v28 = vand.u32 4294901760, %v3644_v58  ;;  %v923_v40 = vpop.f32.mrf.mxu1 }
 0x14e   :  { %2498 = vmatpush3.xpose.msra.mxu0 %v4154_v4  ;;  %2528 = vmatpush3.xpose.msra.mxu1 %v3253_v46  ;;  %v4159_v46 = vand.u32 4294901760, %v3402_v24  ;;  %v4180_v24 = vld [vmem:[#allocation18_spill] sm:$0xff] }
 0x14f   :  { %2499 = vmatprep.subr.mxu0 %v4155_v45  ;;  %2529 = vmatprep.subr.mxu1 %v3258_v49  ;;  %v4160_v49 = vand.u32 4294901760, %v3416_v22  ;;  %v4182_v22 = vld [vmem:[#allocation27_spill] sm:$0xff]  ;;  %v925_v58 = vpop.f32.mrf.mxu1 }
 0x150   :  { %2559 = vmatprep.mubr.f32.mxu1 %v2984_v31 }
 0x152   :  { %2500 = vmatpush3.xpose.msra.mxu0 %v4156_v21  ;;  %2530 = vmatpush3.xpose.msra.mxu1 %v3274_v60  ;;  %v4161_v60 = vand.u32 4294901760, %v3437_v52  ;;  %v4184_v52 = vand.u32 4294901760, %v3676_v27 }
 0x153   :  { %2501 = vmatprep.subr.mxu0 %v4157_v1  ;;  %2531 = vmatprep.subr.mxu1 %v3282_v32  ;;  %v4162_v32 = vand.u32 4294901760, %v3444_v7  ;;  %v4185_v7 = vld [vmem:[#allocation24_spill] sm:$0xff] }
 0x156   :  { %2502 = vmatpush3.xpose.msra.mxu0 %v4158_v18  ;;  %2532 = vmatpush3.xpose.msra.mxu1 %v3299_v35  ;;  %v4164_v35 = vand.u32 4294901760, %v3472_v33  ;;  %v4187_v33 = vld [vmem:[#allocation25_spill] sm:$0xff]  ;;  %v2075_v18 = vlaneseq }
 0x157   :  { %2503 = vmatprep.subr.mxu0 %v4159_v46  ;;  %2533 = vmatprep.subr.mxu1 %v3318_v30  ;;  %v4166_v30 = vand.u32 4294901760, %v3511_v42  ;;  %v4175_v42 = vld [vmem:[#allocation22_spill] sm:$0xff] }
 0x158   :  { %v4176_v14 = vand.u32 4294901760, %v4175_v42  ;;  %v83_v42 = vld [vmem:[%s3889_s0 + $0x18] sm:$0xff] }
 0x15a   :  { %2504 = vmatpush3.xpose.msra.mxu0 %v4160_v49  ;;  %2534 = vmatpush3.xpose.msra.mxu1 %v3331_v54  ;;  %v4168_v54 = vand.u32 4294901760, %v4135_v0  ;;  %v81_v0 = vld [vmem:[%s3889_s0 + $0x8] sm:$0xff] }
 0x15b   :  { %2505 = vmatprep.subr.mxu0 %v4161_v60  ;;  %2535 = vmatprep.subr.mxu1 %v3345_v16  ;;  %v4169_v16 = vand.u32 4294901760, %v4137_v26 }
 0x15e   :  { %2506 = vmatpush3.xpose.msra.mxu0 %v4162_v32  ;;  %2536 = vmatpush3.xpose.msra.mxu1 %v3368_v36  ;;  %v4173_v36 = vld [vmem:[#allocation17_spill] sm:$0xff] }
 0x15f   :  { %2507 = vmatprep.subr.mxu0 %v4163_v9  ;;  %2537 = vmatprep.subr.mxu1 %v3370_v13  ;;  %v4174_v13 = vand.u32 4294901760, %v4173_v36 }
 0x162   :  { %2508 = vmatpush3.xpose.msra.mxu0 %v4164_v35  ;;  %2538 = vmatpush3.xpose.msra.mxu1 %v3392_v48  ;;  %v4177_v48 = vand.u32 4294901760, %v3623_v44  ;;  %v448_v44 = vpop.f32.mrf.mxu0  ;;  %v82_v35 = vld [vmem:[%s3889_s0 + $0x10] sm:$0xff] }
 0x163   :  { %2509 = vmatprep.subr.mxu0 %v4165_v20  ;;  %2539 = vmatprep.subr.mxu1 %v3408_v53  ;;  %v4181_v53 = vand.u32 4294901760, %v3658_v34 }
 0x164   :  { %v450_v51 = vpop.f32.mrf.mxu0 }
 0x166   :  { %2510 = vmatpush3.xpose.msra.mxu0 %v4166_v30  ;;  %2540 = vmatpush3.xpose.msra.mxu1 %v3418_v12  ;;  %v4183_v12 = vand.u32 4294901760, %v4182_v22 }
 0x167   :  { %2511 = vmatprep.subr.mxu0 %v4167_v43  ;;  %2541 = vmatprep.subr.mxu1 %v4134_v11 }
 0x16a   :  { %2512 = vmatpush3.xpose.msra.mxu0 %v4168_v54  ;;  %2542 = vmatpush3.xpose.msra.mxu1 %v4136_v59 }
 0x16b   :  { %2513 = vmatprep.subr.mxu0 %v4169_v16  ;;  %2543 = vmatprep.subr.mxu1 %v4138_v55  ;;  %v2076_v16 = vand.u32 127, %v2075_v18 }
 0x16e   :  { %2514 = vmatpush3.xpose.msra.mxu0 %v4171_v38  ;;  %2544 = vmatpush3.xpose.msra.mxu1 %v4140_v47  ;;  %v80_v47 = vld [vmem:[%s3889_s0] sm:$0xff]  ;;  %s2589_s0 = smov [#allocation3]  }
 0x16f   :  { %2515 = vmatprep.subr.mxu0 %v4172_v50  ;;  %2545 = vmatprep.subr.mxu1 %v4142_v19  ;;  %s2133_s18 = sshll.u32 %s2589_s0, 4  ;;  %s2134_s18 = int_to_ptr.vmem [resolvable:$true] %s2133_s18 }
 0x170   :  { %s2566_s20 = scalar_lea.vmem %s2134_s18, 16  ;;  %s2570_s21 = scalar_lea.vmem %s2134_s18, 32 }
 0x171   :  { %p2567_p0 = scmp.ne.s32.totalorder %s2134_s18, %s2566_s20  ;;  %p2571_p1 = scmp.lt.s32.totalorder %s2134_s18, %s2134_s18 }
 0x172   :  { %2516 = vmatpush3.xpose.msra.mxu0 %v4174_v13  ;;  %2546 = vmatpush3.xpose.msra.mxu1 %v4143_v57  ;;  %p2572_p2 = scmp.lt.s32.totalorder %s2570_s21, %s2566_s20 }
 0x173   :  { %2517 = vmatprep.subr.mxu0 %v4176_v14  ;;  %2547 = vmatprep.subr.mxu1 %v4144_v39  ;;  %v681_v39 = vadd.f32 %v680_v41, %v448_v44 }
 0x174   :  { %p2573_p3 = por %p2572_p2, %p2571_p1 }
 0x176   :  { %2518 = vmatpush3.xpose.msra.mxu0 %v4177_v48  ;;  %2548 = vmatpush3.xpose.msra.mxu1 %v4145_v17  ;;  %p2574_p4 = pnand %p2573_p3, %p2567_p0 }
 0x177   :  { %2519 = vmatprep.subr.mxu0 %v4178_v61  ;;  %2549 = vmatprep.subr.mxu1 %v4146_v23  ;;  %v2059_v23 = vpop.permute.xlu0 %2058 }
 0x178   :  { %v2062_v45 = vmul.f32 %v2059_v23, %v81_v0  ;;  %v2061_v49 = vmul.f32 %v2059_v23, %v80_v47  ;;  %v2063_v36 = vmul.f32 %v2059_v23, %v82_v35 }
 0x17a   :  { %2520 = vmatpush3.xpose.msra.mxu0 %v4179_v28  ;;  %2550 = vmatpush3.xpose.msra.mxu1 %v4180_v24  ;;  %v2079_v24 = vadd.s32 384, %v2076_v16 }
 0x17b   :  { %2521 = vmatprep.subr.mxu0 %v4181_v53  ;;  %2551 = vmatprep.subr.mxu1 %v4147_v62  ;;  %v817_v62 = vpop.f32.mrf.mxu0 }
 0x17c   :  { %vm2088_vm1 = vcmp.lt.s32.totalorder %v2079_v24, 400 }
 0x17e   :  { %2522 = vmatpush3.xpose.msra.mxu0 %v4183_v12  ;;  %2552 = vmatpush3.xpose.msra.mxu1 %v4148_v6  ;;  %v819_v6 = vpop.f32.mrf.mxu0 }
 0x17f   :  { %2523 = vmatprep.subr.mxu0 %v4184_v52  ;;  %2553 = vmatprep.subr.mxu1 %v4185_v7  ;;  %v2064_v52 = vmul.f32 %v2059_v23, %v83_v42 }
 0x182   :  { %2524 = vmatpush3.xpose.msra.mxu0 %v4186_v63  ;;  %2554 = vmatpush3.xpose.msra.mxu1 %v3625_v56 }
 0x183   :  { %2555 = vmatprep.subr.mxu1 %v4187_v33 }
 0x185   :  { %2526 = vmatmul.mubr.f32.vlgmr.msra.gmra.mxu0 %v2984_v31  ;;  %v1091_v56 = vpop.f32.mrf.mxu0 }
 0x186   :  { %2556 = vmatpush3.xpose.msra.mxu1 %v3649_v10  ;;  %v683_v10 = vadd.f32 %v682_v29, %v450_v51 }
 0x187   :  { %2557 = vmatprep.subr.mxu1 %v3653_v8  ;;  %v1093_v57 = vpop.f32.mrf.mxu0 }
 0x18a   :  { %2558 = vmatpush3.xpose.msra.mxu1 %v3667_v15  ;;  %v820_v15 = vadd.f32 %v819_v6, %v683_v10 }
 0x18c   :  { %v926_v11 = vadd.f32 %v925_v58, %v820_v15 }
 0x18d   :  { %2560 = vmatmul.mubr.f32.vlgmr.msra.gmra.mxu1 %v2984_v31  ;;  %v1195_v34 = vpop.f32.mrf.mxu1  ;;  %v818_v31 = vadd.f32 %v817_v62, %v681_v39 }
 0x18e   :  { %v1094_v55 = vadd.f32 %v1093_v57, %v926_v11 }
 0x18f   :  { %v1197_v27 = vpop.f32.mrf.mxu1  ;;  %v924_v26 = vadd.f32 %v923_v40, %v818_v31 }
 0x190   :  { %v1198_v4 = vadd.f32 %v1197_v27, %v1094_v55 }
 0x191   :  { %v1092_v5 = vadd.f32 %v1091_v56, %v924_v26 }
 0x192   :  { %v2066_v20 = vsub.f32 %v1198_v4, %v2062_v45 }
 0x193   :  { %v1196_v46 = vadd.f32 %v1195_v34, %v1092_v5 }
 0x194   :  { %v2070_v14 = vmul.f32 %v2066_v20, %v81_v0 }
 0x195   :  { %v2065_v25 = vsub.f32 %v1196_v46, %v2061_v49 }
 0x197   :  { %v2069_v53 = vmul.f32 %v2065_v25, %v80_v47 }
 0x199   :  { %v2112_v33 = vadd.f32 %v2070_v14, %v2069_v53 }
 0x1c5   :  { %v1303_v3 = vpop.f32.mrf.mxu0 }
 0x1c7   :  { %v1305_v17 = vpop.f32.mrf.mxu0 }
 0x1cd   :  { %v1535_v8 = vpop.f32.mrf.mxu1 }
 0x1ce   :  { %v1536_v21 = vadd.f32 %v1535_v8, %v1303_v3 }
 0x1cf   :  { %v1537_v59 = vpop.f32.mrf.mxu1 }
 0x1d0   :  { %v1538_v60 = vadd.f32 %v1537_v59, %v1305_v17 }
 0x205   :  { %v1672_v37 = vpop.f32.mrf.mxu0 }
 0x206   :  { %v1673_v32 = vadd.f32 %v1672_v37, %v1536_v21 }
 0x207   :  { %v1674_v2 = vpop.f32.mrf.mxu0 }
 0x208   :  { %v1675_v30 = vadd.f32 %v1674_v2, %v1538_v60 }
 0x20d   :  { %v1778_v19 = vpop.f32.mrf.mxu1 }
 0x20e   :  { %v1779_v43 = vadd.f32 %v1778_v19, %v1673_v32 }
 0x20f   :  { %v1780_v9 = vpop.f32.mrf.mxu1 }
 0x210   :  { %v1781_v38 = vadd.f32 %v1780_v9, %v1675_v30 }
 0x245   :  { %v1946_v1 = vpop.f32.mrf.mxu0 }
 0x246   :  { %v1947_v50 = vadd.f32 %v1946_v1, %v1779_v43 }
 0x247   :  { %v1948_v54 = vpop.f32.mrf.mxu0 }
 0x248   :  { %v1949_v48 = vadd.f32 %v1948_v54, %v1781_v38 }
 0x24d   :  { %v2050_v13 = vpop.f32.mrf.mxu1 }
 0x24e   :  { %v2051_v61 = vadd.f32 %v2050_v13, %v1947_v50 }
 0x24f   :  { %v2052_v28 = vpop.f32.mrf.mxu1 }
 0x250   :  { %v2067_v22 = vsub.f32 %v2051_v61, %v2063_v36  ;;  %v2053_v12 = vadd.f32 %v2052_v28, %v1949_v48 }
 0x252   :  { %v2071_v7 = vmul.f32 %v2067_v22, %v82_v35  ;;  %v2068_v63 = vsub.f32 %v2053_v12, %v2064_v52 }
 0x254   :  { %v2072_v44 = vmul.f32 %v2068_v63, %v83_v42  ;;  %v2113_v51 = vadd.f32 %v2112_v33, %v2071_v7 }
 0x256   :  { %v2092_v41 = vsel %vm2088_vm1, %v2072_v44, 0.0 }
 0x257   :  { %v2114_v62 = vadd.f32 %v2113_v51, %v2092_v41 }
 0x259   :  { %2115 = vadd.xlane.f32.xlu0 %v2114_v62 }
 0x2e2   :  { %v2116_v29 = vpop.xlane.xlu0 %2115 }
 0x2e3   :  { %v2117_v6 = vrot.slane %v2116_v29, 4 }
 0x2e5   :  { %v2118_v40 = vadd.f32 %v2117_v6, %v2116_v29 }
 0x2e7   :  { %v2119_v56 = vrot.slane %v2118_v40, 2 }
 0x2e9   :  { %v2120_v58 = vadd.f32 %v2119_v56, %v2118_v40 }
 0x2eb   :  { %v2121_v57 = vrot.slane %v2120_v58, 1 }
 0x2ed   :  { %v2122_v34 = vadd.f32 %v2121_v57, %v2120_v58 }
 0x2ef   :  { %2561 = vpush %v2122_v34 }
 0x320   :  { %s2562_s19 = spop %2561 }
 0x321   :  { %v2124_v3 = vstv %s2562_s19 }
 0x322   :  { %2126 = vst.msk [vmem:[#allocation3] sm:$0x1] %vm2125_vm2, %v2124_v3 }
 0x323   :  { %2577 = shalt.err (!%p2574_p4)
}
 0x324   :  { %2136 = dma.vmem_to_hbm [thread:$0]  %s2134_s18, 16, %s3893_s4, [#allocation4]  }
 0x325   :  { %2586 = dma.done.wait [#allocation4], 16  }
 0x326   :  { %2587 = vsyncadd [#allocation4], 4294967280 }
 0x327   :  { %2140 = vsyncpa [#allocation4], 1 }

</bundles_post_ra>
